<compile_context>
chip_gen: v7x
topology: tpu7x:2x2x1
jax: 0.10.0
libtpu: 0.0.40
codegen_flags: <defaults>
</compile_context>

<pallas_src>
import functools

import jax
import jax.numpy as jnp
from jax import lax
from jax.experimental import pallas as pl
from jax.experimental.pallas import tpu as pltpu


# ------------------------------------------------------------------- kernel --

def _up_conv_kernel(x_ref, w_ref, b_ref, o_ref, *, th, W, cin, cout, neg_slope, fused):
    """One (batch, row-tile) grid step.

    x_ref: (1, Hp+2, W+2, Cin) bf16  zero-padded ORIGINAL-resolution image (full image)
    w_ref: fused  -> (9*Cin, 4*Cout) bf16  parity-packed im2col weights
           !fused -> (4, 4, Cin, Cout) bf16  per-parity 2x2-tap weights
    b_ref: (1, 4*Cout) f32  BN-folded bias, replicated per parity
    o_ref: (1, th, W, 4*Cout) f32  last-dim index = (2*py + px)*Cout + c
    """
    t = pl.program_id(1)
    row0 = pl.multiple_of(t * th, th)               # th is a multiple of 8 -> aligned
    xt = x_ref[0, pl.ds(row0, th + 2), :, :]        # (th+2, W+2, Cin) bf16
    bias = b_ref[...]                               # (1, 4*Cout) f32

    # 9 distinct shifted patches, hoisted & deduplicated (shared by all parity classes).
    patches = {}
    for r in range(3):
        for c in range(3):
            p = lax.slice(xt, (r, c, 0), (r + th, c + W, cin))      # (th, W, Cin)
            patches[(r, c)] = p.reshape(th * W, cin)

    if fused:
        # Small Cout: one lane-dense matmul (th*W, 9*Cin) x (9*Cin, 4*Cout).
        lhs = jnp.concatenate(
            [patches[(r, c)] for r in range(3) for c in range(3)], axis=1)
        acc = jnp.dot(lhs, w_ref[...], preferred_element_type=jnp.float32)
        y = acc + bias
        y = jnp.where(y > 0, y, neg_slope * y)                      # LeakyReLU(0.01)
        o_ref[0, :, :, :] = y.reshape(th, W, 4 * cout).astype(o_ref.dtype)
    else:
        # Cout >= 128: per-parity accumulating dots; full-lane-aligned stores.
        for py in range(2):
            for px in range(2):
                pidx = 2 * py + px
                acc = None
                for a in range(2):
                    for b in range(2):
                        d = jnp.dot(patches[(py + a, px + b)], w_ref[pidx, 2 * a + b],
                                    preferred_element_type=jnp.float32)
                        acc = d if acc is None else acc + d
                y = acc + bias[:, pidx * cout:(pidx + 1) * cout]
                y = jnp.where(y > 0, y, neg_slope * y)
                o_ref[0, :, :, pidx * cout:(pidx + 1) * cout] = (
                    y.reshape(th, W, cout).astype(o_ref.dtype))


# --------------------------------------------------------------- weight prep --

# Which original 3x3 taps (ky or kx) feed input offset a/b for output parity py/px.
_GROUPS = {(0, 0): (0,), (0, 1): (1, 2), (1, 0): (0, 1), (1, 1): (2,)}


def _parity_tap(w_eff, py, px, a, b):
    cin, cout = w_eff.shape[2], w_eff.shape[3]
    acc = jnp.zeros((cin, cout), jnp.float32)
    for ky in _GROUPS[(py, a)]:
        for kx in _GROUPS[(px, b)]:
            acc = acc + w_eff[ky, kx]
    return acc                                                     # (Cin, Cout)


def _pack_weights(w_eff, fused):
    """BN-folded (3,3,Cin,Cout) -> parity weights in the layout the kernel expects."""
    cin, cout = w_eff.shape[2], w_eff.shape[3]
    if fused:
        wk = jnp.zeros((3, 3, cin, 4, cout), jnp.float32)
        for py in range(2):
            for px in range(2):
                for a in range(2):
                    for b in range(2):
                        wk = wk.at[py + a, px + b, :, 2 * py + px, :].set(
                            _parity_tap(w_eff, py, px, a, b))
        return wk.reshape(9 * cin, 4 * cout).astype(jnp.bfloat16)
    wk = jnp.stack([
        jnp.stack([_parity_tap(w_eff, py, px, a, b)
                   for a in range(2) for b in range(2)], axis=0)
        for py in range(2) for px in range(2)], axis=0)            # (4, 4, Cin, Cout)
    return wk.astype(jnp.bfloat16)


# ------------------------------------------------------------------- tiling --

def _vmem_budget():
    """(tiling budget, vmem_limit_bytes): 128-MiB parts (v5e/v6e) vs 64-MiB v7x."""
    try:
        cap = int(pltpu.get_tpu_info().vmem_capacity_bytes)
    except Exception:
        cap = 64 << 20
    if cap >= (100 << 20):
        return 40 << 20, 64 << 20          # v5e / v6e
    return 20 << 20, 32 << 20              # v7x


def _pick_row_tile(N, H, W, cin, cout, budget):
    """Largest row tile th (multiple of 8) fitting budget; prefer >= 2 grid programs."""
    def vmem_need(th):
        hp = pl.cdiv(H, th) * th
        in_b = 2 * (hp + 2) * (W + 2) * cin * 2          # double-buffered bf16 input image
        out_b = 2 * th * W * 4 * cout * 4                # double-buffered f32 output tile
        work = 20 * th * W * cin * 2 + 2 * th * W * 4 * cout * 4   # patches/lhs/acc (generous)
        return in_b + out_b + work + 9 * cin * 4 * cout * 2

    th_max = pl.cdiv(H, 8) * 8
    fitting = [th for th in range(8, th_max + 1, 8) if vmem_need(th) <= budget]
    if not fitting:
        # TODO(synk): switch input to memory_space=pl.ANY + manual halo-row DMA for this case.
        raise ValueError(
            f"up_conv: no row tile fits VMEM budget (H={H}, W={W}, Cin={cin}, Cout={cout})")
    multi = [th for th in fitting if N * pl.cdiv(H, th) >= 2]      # keep both v7x TCs busy
    th = max(multi) if multi else max(fitting)
    return th, pl.cdiv(H, th)


# ------------------------------------------------------------------ forward --

def up_conv_forward(x_nchw, params, *, eps=1e-5, neg_slope=0.01):
    """Pallas forward of up_conv. x_nchw: (N, Cin, H, W) f32 -> (N, Cout, 2H, 2W) f32."""
    w3 = params["w"].astype(jnp.float32)                           # (3, 3, Cin, Cout) HWIO
    scale = params["gamma"] / jnp.sqrt(params["var"] + eps)
    w_eff = w3 * scale                                             # fold BatchNorm (eval)
    b_eff = (params["b"] - params["mean"]) * scale + params["beta"]

    N, Cin, H, W = x_nchw.shape
    Cout = w3.shape[-1]
    fused = Cout < 128                     # small Cout -> parity-in-lanes single matmul

    wk = _pack_weights(w_eff, fused)
    b4 = jnp.tile(b_eff.astype(jnp.float32).reshape(1, Cout), (1, 4))   # (1, 4*Cout)

    budget, vmem_limit = _vmem_budget()
    th, T = _pick_row_tile(N, H, W, Cin, Cout, budget)
    Hp = th * T

    # NCHW -> NHWC bf16; pad halo + extra bottom rows up to Hp (cheap: pre-upsample size).
    x = jnp.transpose(x_nchw, (0, 2, 3, 1)).astype(jnp.bfloat16)
    xp = jnp.pad(x, ((0, 0), (1, 1 + Hp - H), (1, 1), (0, 0)))     # (N, Hp+2, W+2, Cin)

    if fused:
        flops = 2 * N * Hp * W * (9 * Cin) * (4 * Cout)
    else:
        flops = 2 * N * Hp * W * 16 * Cin * Cout
    bytes_accessed = (xp.size * 2 + wk.size * 2 + b4.size * 4
                      + N * Hp * W * 4 * Cout * 4)

    wk_ndim = wk.ndim
    out = pl.pallas_call(
        functools.partial(_up_conv_kernel, th=th, W=W, cin=Cin, cout=Cout,
                          neg_slope=neg_slope, fused=fused),
        out_shape=jax.ShapeDtypeStruct((N, Hp, W, 4 * Cout), jnp.float32),
        grid_spec=pltpu.PrefetchScalarGridSpec(
            num_scalar_prefetch=0,
            grid=(N, T),
            in_specs=[
                pl.BlockSpec((1, Hp + 2, W + 2, Cin), lambda n, t: (n, 0, 0, 0)),
                pl.BlockSpec(wk.shape, lambda n, t: (0,) * wk_ndim),
                pl.BlockSpec((1, 4 * Cout), lambda n, t: (0, 0)),
            ],
            out_specs=pl.BlockSpec((1, th, W, 4 * Cout), lambda n, t: (n, t, 0, 0)),
        ),
        compiler_params=pltpu.CompilerParams(
            dimension_semantics=("parallel", "parallel"),
            vmem_limit_bytes=vmem_limit,
        ),
        cost_estimate=pl.CostEstimate(flops=flops, transcendentals=0,
                                      bytes_accessed=bytes_accessed),
    )(xp, wk, b4)

    # (N, Hp, W, 4*Cout), lane index = (2*py+px)*Cout + c  ->  NCHW (N, Cout, 2H, 2W)
    out = out[:, :H]
    out = out.reshape(N, H, W, 2, 2, Cout)            # (n, m, w, py, px, c)
    out = jnp.transpose(out, (0, 5, 1, 3, 2, 4))      # (n, c, m, py, w, px)
    return out.reshape(N, Cout, 2 * H, 2 * W)


# ---------------------------------------------------------------- reference --

def up_conv_ref(x_nchw, params, *, eps=1e-5, neg_slope=0.01):
    x = jnp.transpose(x_nchw, (0, 2, 3, 1)).astype(jnp.float32)
    u = jnp.repeat(jnp.repeat(x, 2, axis=1), 2, axis=2)            # nearest x2 upsample
    y = lax.conv_general_dilated(u, params["w"].astype(jnp.float32), (1, 1),
                                 [(1, 1), (1, 1)],
                                 dimension_numbers=("NHWC", "HWIO", "NHWC"))
    y = y + params["b"]
    y = (y - params["mean"]) / jnp.sqrt(params["var"] + eps) * params["gamma"] + params["beta"]
    y = jnp.where(y > 0, y, neg_slope * y)
    return jnp.transpose(y, (0, 3, 1, 2))


# --------------------------------------------------------------------- main --

def _make_params(key, cin, cout, wscale):
    k = jax.random.split(key, 6)
    return {
        "w": wscale * jax.random.normal(k[0], (3, 3, cin, cout), jnp.float32),
        "b": 0.1 * jax.random.normal(k[1], (cout,), jnp.float32),
        "gamma": jax.random.uniform(k[2], (cout,), jnp.float32, 0.5, 1.5),
        "beta": 0.1 * jax.random.normal(k[3], (cout,), jnp.float32),
        "mean": 0.1 * jax.random.normal(k[4], (cout,), jnp.float32),
        "var": jax.random.uniform(k[5], (cout,), jnp.float32, 0.5, 1.5),
    }


def _check(name, out, ref):
    assert out.shape == ref.shape, (name, out.shape, ref.shape)
    # bf16 activations/weights vs f32 reference -> loose absolute tolerance.
    if not bool(jnp.allclose(out, ref, rtol=5e-2, atol=1e-1)):
        err = float(jnp.max(jnp.abs(out - ref)))
        raise AssertionError(f"{name}: mismatch vs reference (max abs err = {err})")


if __name__ == "__main__":
    key = jax.random.PRNGKey(0)
    k1, k2, k3, k4 = jax.random.split(key, 4)
    fwd = jax.jit(up_conv_forward)

    # Test 1: small channels (fused parity-in-lanes matmul path), batch=2, 16x16.
    x1 = jax.random.normal(k1, (2, 4, 16, 16), jnp.float32)        # NCHW, like PyTorch
    p1 = _make_params(k2, 4, 8, 0.2)
    o1 = jax.block_until_ready(fwd(x1, p1))
    assert o1.shape == (2, 8, 32, 32), o1.shape
    _check("small-channel", o1, up_conv_ref(x1, p1))

    # Test 2: production-like channels (per-parity full-lane path) + H not divisible by th.
    x2 = jax.random.normal(k3, (1, 128, 12, 16), jnp.float32)
    p2 = _make_params(k4, 128, 128, 0.05)
    o2 = jax.block_until_ready(fwd(x2, p2))
    assert o2.shape == (1, 128, 24, 32), o2.shape
    _check("large-channel", o2, up_conv_ref(x2, p2))

    print("KERNEL_OK")
</pallas_src>

<mosaic_0001>
module attributes {stable_mosaic.version = 11 : i64} {
  func.func @_up_conv_kernel(%arg0: i32, %arg1: i32, %arg2: memref<1x18x18x4xbf16, #tpu.memory_space<vmem>>, %arg3: memref<36x32xbf16, #tpu.memory_space<vmem>>, %arg4: memref<1x32xf32, #tpu.memory_space<vmem>>, %arg5: memref<1x16x16x32xf32, #tpu.memory_space<vmem>>) attributes {dimension_semantics = [#tpu.dimension_semantics<parallel>, #tpu.dimension_semantics<parallel>], iteration_bounds = array<i64: 2, 1>, scalar_prefetch = 0 : i64, scratch_operands = 0 : i64, tpu.core_type = #tpu.core_type<tc>, window_params = [{transform_indices = @transform_0, window_bounds = array<i64: 1, 18, 18, 4>}, {pipeline_mode = #tpu.pipeline_mode<synchronous>, transform_indices = @transform_1, window_bounds = array<i64: 36, 32>}, {pipeline_mode = #tpu.pipeline_mode<synchronous>, transform_indices = @transform_2, window_bounds = array<i64: 1, 32>}, {transform_indices = @transform_3, window_bounds = array<i64: 1, 16, 16, 32>}]} {
    %c16_i32 = arith.constant 16 : i32
    %0 = arith.muli %arg1, %c16_i32 : i32
    %1 = tpu.assume_multiple %0, 16 : i32
    %c0 = arith.constant 0 : index
    %2 = arith.index_cast %1 : i32 to index
    %c0_0 = arith.constant 0 : index
    %c0_1 = arith.constant 0 : index
    %3 = vector.load %arg2[%c0, %2, %c0_0, %c0_1] : memref<1x18x18x4xbf16, #tpu.memory_space<vmem>>, vector<1x18x18x4xbf16>
    %4 = vector.shape_cast %3 : vector<1x18x18x4xbf16> to vector<18x18x4xbf16>
    %c0_2 = arith.constant 0 : index
    %c0_3 = arith.constant 0 : index
    %5 = vector.load %arg4[%c0_2, %c0_3] : memref<1x32xf32, #tpu.memory_space<vmem>>, vector<1x32xf32>
    %6 = vector.extract_strided_slice %4 {offsets = [0, 0, 0], sizes = [16, 16, 4], strides = [1, 1, 1]} : vector<18x18x4xbf16> to vector<16x16x4xbf16>
    %7 = vector.shape_cast %6 : vector<16x16x4xbf16> to vector<256x4xbf16>
    %8 = vector.extract_strided_slice %4 {offsets = [0, 1, 0], sizes = [16, 16, 4], strides = [1, 1, 1]} : vector<18x18x4xbf16> to vector<16x16x4xbf16>
    %9 = vector.shape_cast %8 : vector<16x16x4xbf16> to vector<256x4xbf16>
    %10 = vector.extract_strided_slice %4 {offsets = [0, 2, 0], sizes = [16, 16, 4], strides = [1, 1, 1]} : vector<18x18x4xbf16> to vector<16x16x4xbf16>
    %11 = vector.shape_cast %10 : vector<16x16x4xbf16> to vector<256x4xbf16>
    %12 = vector.extract_strided_slice %4 {offsets = [1, 0, 0], sizes = [16, 16, 4], strides = [1, 1, 1]} : vector<18x18x4xbf16> to vector<16x16x4xbf16>
    %13 = vector.shape_cast %12 : vector<16x16x4xbf16> to vector<256x4xbf16>
    %14 = vector.extract_strided_slice %4 {offsets = [1, 1, 0], sizes = [16, 16, 4], strides = [1, 1, 1]} : vector<18x18x4xbf16> to vector<16x16x4xbf16>
    %15 = vector.shape_cast %14 : vector<16x16x4xbf16> to vector<256x4xbf16>
    %16 = vector.extract_strided_slice %4 {offsets = [1, 2, 0], sizes = [16, 16, 4], strides = [1, 1, 1]} : vector<18x18x4xbf16> to vector<16x16x4xbf16>
    %17 = vector.shape_cast %16 : vector<16x16x4xbf16> to vector<256x4xbf16>
    %18 = vector.extract_strided_slice %4 {offsets = [2, 0, 0], sizes = [16, 16, 4], strides = [1, 1, 1]} : vector<18x18x4xbf16> to vector<16x16x4xbf16>
    %19 = vector.shape_cast %18 : vector<16x16x4xbf16> to vector<256x4xbf16>
    %20 = vector.extract_strided_slice %4 {offsets = [2, 1, 0], sizes = [16, 16, 4], strides = [1, 1, 1]} : vector<18x18x4xbf16> to vector<16x16x4xbf16>
    %21 = vector.shape_cast %20 : vector<16x16x4xbf16> to vector<256x4xbf16>
    %22 = vector.extract_strided_slice %4 {offsets = [2, 2, 0], sizes = [16, 16, 4], strides = [1, 1, 1]} : vector<18x18x4xbf16> to vector<16x16x4xbf16>
    %23 = vector.shape_cast %22 : vector<16x16x4xbf16> to vector<256x4xbf16>
    %24 = tpu.concatenate %7, %9, %11, %13, %15, %17, %19, %21, %23 in 1 : vector<256x4xbf16>, vector<256x4xbf16>, vector<256x4xbf16>, vector<256x4xbf16>, vector<256x4xbf16>, vector<256x4xbf16>, vector<256x4xbf16>, vector<256x4xbf16>, vector<256x4xbf16> -> vector<256x36xbf16>
    %c0_4 = arith.constant 0 : index
    %c0_5 = arith.constant 0 : index
    %25 = vector.load %arg3[%c0_4, %c0_5] : memref<36x32xbf16, #tpu.memory_space<vmem>>, vector<36x32xbf16>
    %cst = arith.constant dense<0.000000e+00> : vector<256x32xf32>
    %26 = tpu.matmul %24, %25, %cst {dimension_numbers = #tpu.dot_dimension_numbers<[1], [0], [0], [1], [0, 0, 1, 1], [], []>} : vector<256x36xbf16>, vector<36x32xbf16>, vector<256x32xf32> -> vector<256x32xf32>
    %27 = vector.broadcast %5 : vector<1x32xf32> to vector<256x32xf32>
    %28 = arith.addf %26, %27 : vector<256x32xf32>
    %cst_6 = arith.constant 0.000000e+00 : f32
    %29 = vector.broadcast %cst_6 : f32 to vector<256x32xf32>
    %30 = arith.cmpf ogt, %28, %29 : vector<256x32xf32>
    %cst_7 = arith.constant 0.00999999977 : f32
    %31 = vector.broadcast %cst_7 : f32 to vector<256x32xf32>
    %32 = arith.mulf %31, %28 : vector<256x32xf32>
    %33 = arith.select %30, %28, %32 : vector<256x32xi1>, vector<256x32xf32>
    %34 = vector.shape_cast %33 : vector<256x32xf32> to vector<16x16x32xf32>
    %c0_8 = arith.constant 0 : index
    %c0_9 = arith.constant 0 : index
    %c0_10 = arith.constant 0 : index
    %c0_11 = arith.constant 0 : index
    %35 = vector.load %arg5[%c0_8, %c0_9, %c0_10, %c0_11] : memref<1x16x16x32xf32, #tpu.memory_space<vmem>>, vector<1x16x16x32xf32>
    %36 = vector.shape_cast %35 : vector<1x16x16x32xf32> to vector<16x16x32xf32>
    %37 = vector.shape_cast %34 : vector<16x16x32xf32> to vector<1x16x16x32xf32>
    tpu.vector_store %arg5[%c0_8, %c0_9, %c0_10, %c0_11], %37 {strides = array<i32>} : memref<1x16x16x32xf32, #tpu.memory_space<vmem>>, vector<1x16x16x32xf32>,
    return
  }
  func.func @transform_0(%arg0: i32, %arg1: i32) -> (i32, i32, i32, i32) {
    %c0_i32 = arith.constant 0 : i32
    %c0_i32_0 = arith.constant 0 : i32
    %c0_i32_1 = arith.constant 0 : i32
    %c0_i32_2 = arith.constant 0 : i32
    return %arg0, %c0_i32, %c0_i32_0, %c0_i32_1 : i32, i32, i32, i32
  }
  func.func @transform_1(%arg0: i32, %arg1: i32) -> (i32, i32) {
    %c0_i32 = arith.constant 0 : i32
    %c0_i32_0 = arith.constant 0 : i32
    %c0_i32_1 = arith.constant 0 : i32
    return %c0_i32, %c0_i32_0 : i32, i32
  }
  func.func @transform_2(%arg0: i32, %arg1: i32) -> (i32, i32) {
    %c0_i32 = arith.constant 0 : i32
    %c0_i32_0 = arith.constant 0 : i32
    %c0_i32_1 = arith.constant 0 : i32
    return %c0_i32, %c0_i32_0 : i32, i32
  }
  func.func @transform_3(%arg0: i32, %arg1: i32) -> (i32, i32, i32, i32) {
    %c0_i32 = arith.constant 0 : i32
    %c0_i32_0 = arith.constant 0 : i32
    %c0_i32_1 = arith.constant 0 : i32
    return %arg0, %arg1, %c0_i32, %c0_i32_0 : i32, i32, i32, i32
  }
}

</mosaic_0001>

<bundles_post_ra>
// kernel: up_conv_forward.1
= control target key start
LH: loop header
LB: loop body
LE: loop exit
PB: predicated region body
PF: predicated region fallthrough
CT: control target
= control target key end

     0   :  { %s2287_s12 = smov 0   ;;  %s2289_s13 = smov 0   ;;  %s3523_s0 = inlined_call_operand.vmem [shape: bf16[2,18,18,4], index: 0, kind: input, shape index: {}]   ;;  %s3524_s1 = inlined_call_operand.vmem [shape: bf16[36,32], index: 1, kind: input, shape index: {}]   ;;  %s3525_s2 = inlined_call_operand.vmem [shape: f32[1,32], index: 2, kind: input, shape index: {}]   ;;  %s3526_s3 = inlined_call_operand.vmem [shape: f32[2,16,16,32], index: 3, kind: output, shape index: {}]  }
   0x1   :  { %s2291_s14 = smov 0  }
   0x2 LB: > { %s25_s15 = sadd.s32 1, %s2253_s13  ;;  %p2017_p0 = scmp.ge.s32.totalorder %s2257_s14, 1  ;;  %s2257_s14 = sphi %s2291_s14, %s13_s14   ;;  %s2253_s13 = sphi %s2289_s13, %s3553_s13   ;;  %s2249_s12 = sphi %s2287_s12, %s3552_s12  }
   0x3   : > { %p27_p1 = scmp.ge.s32.totalorder %s25_s15, 2  ;;  %p151_p2 = scmp.lt.s32.totalorder %s2257_s14, 3 }
   0x5   : > { %s3555_s15 = smov (%p27_p1, %s25_s15), 0  ;;  %p152_p3 = pnand %p2017_p0, %p151_p2 }
   0x7   : > { %155 = sbr.rel (%p152_p3) target bundleno = 627 (0x273), region = 32 }
   0xe   : > { %p180_p4 = scmp.lt.s32.totalorder %s2249_s12, 1  ;;  %vm691_vm0 = vcmask 1042432   ;;  %vm692_vm1 = vcmask 1046532   ;;  %vm256_vm2 = vsmask.f32 3328  ;;  %s2259_s20 = smov 12  }
   0xf   : > { %vm257_vm3 = vsmask.f32 7440  ;;  %vm2343_vm4 = vmor %vm691_vm0, %vm692_vm1  ;;  %s2260_s21 = smov 8   ;;  %s2261_s22 = smov 4   ;;  %vm1631_vm6 = vcmask 1041408   ;;  %vm1292_vm7 = vcmask 31744  }
  0x10   : > { %s3557_s12 = smov (!%p180_p4, %s2249_s12), 1  ;;  %vm2388_vm5 = vmor %vm256_vm2, %vm257_vm3  ;;  %s2262_s23 = smov 16   ;;  %vm1341_vm8 = vcmask 64512   ;;  %vm1374_vm9 = vcmask 97280   ;;  %vm1407_vm10 = vcmask 130048   ;;  %vm1440_vm11 = vcmask 162816  }
  0x11   : > { %s2181_s16 = smul.u32 216, %s3557_s12  ;;  %s2263_s24 = smov 20   ;;  %vm1473_vm12 = vcmask 195584   ;;  %vm1506_vm13 = vcmask 228352   ;;  %vm1539_vm14 = vcmask 261120   ;;  %vm1598_vm15 = vcmask 293888  }
  0x12   : > { %s2264_s25 = smov 24   ;;  %s2265_s28 = smov 28  }
  0x13   : > { %s2311_s19 = scalar_lea.vmem %s3523_s0, %s2181_s16  ;;  %s2266_s4 = smov 32  }
  0x14   : > { %v2314_v0 = vld [vmem:[%s2311_s19 + $0x6c] sm:$0xf]  ;;  %v2317_v1 = vld [vmem:[%s2311_s19 + $0x70] sm:$0xf]  ;;  %v2331_v12 = vld [vmem:[%s2311_s19 + $0x60] sm:$0xf] }
  0x15   : > { %v204_v2 = vld [vmem:[%s2311_s19 + $0xc] sm:$0xf]  ;;  %v489_v3 = vshrl.u32 %v2317_v1, 16  ;;  %v2323_v4 = vcombine.low %v2314_v0, %v2317_v1  ;;  %v476_v5 = vshrl.u32 %v2314_v0, 16  ;;  %v479_v6 = vshll.u32 %v2314_v0, 16  ;;  %s2115_s9 = sshll.u32 %s3557_s12, 8 }
  0x16   : > { %v205_v7 = vld [vmem:[%s2311_s19 + $0x10] sm:$0xf]  ;;  %v284_v11 = vshrl.u32 %v204_v2, 16  ;;  %v287_v13 = vshll.u32 %v204_v2, 16  ;;  %v2336_v14 = vld [vmem:[%s2311_s19 + $0x64] sm:$0xf]  ;;  %s3418_s16 = scalar_lea.vmem %s3526_s3, %s2115_s9 }
  0x17   : > { %v293_v8 = vshll.u32 %v205_v7, 16  ;;  %v297_v9 = vshrl.u32 %v205_v7, 16  ;;  %v2328_v10 = vcombine.low %v204_v2, %v205_v7  ;;  %1101 = vrot.lane.b32.xlu1 %v2323_v4, %s2259_s20  ;;  %v2339_v15 = vld [vmem:[%s2311_s19 + $0x68] sm:$0x1]  ;;  %v2029_v17 = vrot.slane %v2331_v12, 9 }
  0x18   : > { %v286_v19 = vrot.slane %v284_v11, 4  ;;  %v752_v20 = vrot.slane %v2336_v14, 5  ;;  %v755_v21 = vrot.slane %v2339_v15, 5  ;;  %v2353_v22 = vld [vmem:[%s2311_s19] sm:$0xf]  ;;  %v289_v23 = vrot.slane %v287_v13, 5 }
  0x19   : > { %v299_v18 = vrot.slane %v297_v9, 4  ;;  %1085 = vrot.lane.b32.xlu0 %v2328_v10, %s2259_s20  ;;  %v2356_v24 = vld [vmem:[%s2311_s19 + $0x4] sm:$0xf]  ;;  %v203_v25 = vld [vmem:[%s2311_s19 + $0x8] sm:$0x1]  ;;  %v2021_v26 = vrot.slane %v2353_v22, 9 }
  0x1a   : > { %v753_v27 = vsel %vm2343_vm4, %v2029_v17, %v752_v20  ;;  %v754_v28 = vrot.slane %v752_v20, 4  ;;  %v696_v29 = vrot.slane %v2356_v24, 5  ;;  %v699_v30 = vrot.slane %v203_v25, 5  ;;  %v2364_v31 = vld [vmem:[%s2311_s19 + $0x74] sm:$0x1] }
  0x1b   : > { %v2030_v32 = vrot.slane %v2314_v0, 9  ;;  %v759_v33 = vrot.slane %v2317_v1, 5  ;;  %v762_v34 = vrot.slane %v2364_v31, 5  ;;  %v206_v35 = vld [vmem:[%s2311_s19 + $0x14] sm:$0x1]  ;;  %v2022_v36 = vrot.slane %v204_v2, 9 }
  0x1c   : > { %v756_v37 = vsel %vm2343_vm4, %v754_v28, %v755_v21  ;;  %v697_v38 = vsel %vm2343_vm4, %v2021_v26, %v696_v29  ;;  %v698_v39 = vrot.slane %v696_v29, 4  ;;  %v703_v40 = vrot.slane %v205_v7, 5 }
  0x1d   : > { %v2374_v41 = vcombine.low %v753_v27, %v756_v37  ;;  %v760_v42 = vsel %vm2343_vm4, %v2030_v32, %v759_v33  ;;  %v761_v43 = vrot.slane %v759_v33, 4  ;;  %v706_v44 = vrot.slane %v206_v35, 5 }
  0x1e   : > { %v700_v45 = vsel %vm2343_vm4, %v698_v39, %v699_v30  ;;  %v704_v46 = vsel %vm2343_vm4, %v2022_v36, %v703_v40  ;;  %v705_v47 = vrot.slane %v703_v40, 4  ;;  %v290_v48 = vor.u32 %v289_v23, %v286_v19  ;;  %v2432_v39 = vld [vmem:[%s2311_s19 + $0x7c] sm:$0xf] }
  0x1f   : > { %1066 = vrot.lane.b32.xlu1 %v2374_v41, %s2260_s21  ;;  %v2071_v49 = vcombine.low %v697_v38, %v700_v45  ;;  %v763_v50 = vsel %vm2343_vm4, %v761_v43, %v762_v34  ;;  %v295_v52 = vrot.slane %v293_v8, 5  ;;  %v303_v53 = vshll.u32 %v206_v35, 16  ;;  %v2427_v35 = vld [vmem:[%s2311_s19 + $0x78] sm:$0xf] }
  0x20   : > { %v2392_v54 = vcombine.low %v760_v42, %v763_v50  ;;  %v707_v55 = vsel %vm2343_vm4, %v705_v47, %v706_v44  ;;  %v291_v56 = vrot.slane %v290_v48, 4  ;;  %v260_v57 = vshrl.u32 %v2353_v22, 16  ;;  %v2444_v50 = vld [vmem:[%s2311_s19 + $0x1c] sm:$0xf] }
  0x21   : > { %1050 = vrot.lane.b32.xlu0 %v2071_v49, %s2260_s21  ;;  %v2398_v58 = vcombine.low %v704_v46, %v707_v55  ;;  %v300_v59 = vor.u32 %v299_v18, %v295_v52  ;;  %v305_v60 = vrot.slane %v303_v53, 5  ;;  %v263_v61 = vshll.u32 %v2353_v22, 16  ;;  %v2441_v49 = vld [vmem:[%s2311_s19 + $0x18] sm:$0xf] }
  0x22   : > { %3538 = vst [vmem:[#allocation2_spill] sm:$0xff] %v2392_v54  ;;  %v296_v62 = vsel %vm2388_vm5, %v291_v56, %v295_v52  ;;  %v262_v63 = vrot.slane %v260_v57, 4  ;;  %v269_v2 = vshll.u32 %v2356_v24, 16  ;;  %v273_v7 = vshrl.u32 %v2356_v24, 16 }
  0x23   : > { %1068 = vrot.lane.b32.xlu1 %v2392_v54, %s2260_s21  ;;  %v301_v8 = vrot.slane %v300_v59, 4  ;;  %v265_v9 = vrot.slane %v263_v61, 5  ;;  %v279_v11 = vshll.u32 %v203_v25, 16  ;;  %v478_v13 = vrot.slane %v476_v5, 4 }
  0x24   : > { %v271_v17 = vrot.slane %v269_v2, 5  ;;  %v275_v18 = vrot.slane %v273_v7, 4  ;;  %v481_v19 = vrot.slane %v479_v6, 5  ;;  %v485_v20 = vshll.u32 %v2317_v1, 16 }
  0x25   : > { %1052 = vrot.lane.b32.xlu0 %v2398_v58, %s2260_s21  ;;  %v306_v21 = vsel %vm2388_vm5, %v301_v8, %v305_v60  ;;  %v266_v23 = vor.u32 %v265_v9, %v262_v63  ;;  %v281_v26 = vrot.slane %v279_v11, 5  ;;  %v491_v25 = vrot.slane %v489_v3, 4  ;;  %v233_v60 = vld [vmem:[%s2311_s19 + $0x80] sm:$0x1] }
  0x26   : > { %v2418_v5 = vcombine.low %v296_v62, %v306_v21  ;;  %v276_v27 = vor.u32 %v275_v18, %v271_v17  ;;  %v482_v28 = vor.u32 %v481_v19, %v478_v13  ;;  %v487_v0 = vrot.slane %v485_v20, 5  ;;  %v2468_v20 = vld [vmem:[%s2311_s19 + $0x20] sm:$0x1] }
  0x27   : > { %v267_v6 = vrot.slane %v266_v23, 4  ;;  %v495_v29 = vshll.u32 %v2364_v31, 16  ;;  %v452_v30 = vshrl.u32 %v2331_v12, 16  ;;  %v455_v32 = vshll.u32 %v2331_v12, 16 }
  0x28   : > { %972 = vrot.lane.b32.xlu1 %v2418_v5, %s2261_s22  ;;  %v277_v1 = vrot.slane %v276_v27, 4  ;;  %v483_v33 = vrot.slane %v482_v28, 4  ;;  %v492_v3 = vor.u32 %v491_v25, %v487_v0  ;;  %v461_v34 = vshll.u32 %v2336_v14, 16 }
  0x29   : > { %v272_v31 = vsel %vm2388_vm5, %v267_v6, %v271_v17  ;;  %v497_v36 = vrot.slane %v495_v29, 5  ;;  %v454_v37 = vrot.slane %v452_v30, 4  ;;  %v457_v38 = vrot.slane %v455_v32, 5 }
  0x2a   : > { %v282_v40 = vsel %vm2388_vm5, %v277_v1, %v281_v26  ;;  %v488_v42 = vsel %vm2388_vm5, %v483_v33, %v487_v0  ;;  %v493_v43 = vrot.slane %v492_v3, 4  ;;  %v463_v44 = vrot.slane %v461_v34, 5 }
  0x2b   : > { %v2055_v45 = vcombine.low %v272_v31, %v282_v40  ;;  %v458_v46 = vor.u32 %v457_v38, %v454_v37  ;;  %v465_v47 = vshrl.u32 %v2336_v14, 16  ;;  %v471_v48 = vshll.u32 %v2339_v15, 16 }
  0x2c   : > { %v498_v52 = vsel %vm2388_vm5, %v493_v43, %v497_v36  ;;  %v500_v53 = vshrl.u32 %v2427_v35, 16  ;;  %v503_v55 = vshll.u32 %v2427_v35, 16  ;;  %v513_v56 = vshrl.u32 %v2432_v39, 16 }
  0x2d   : > { %970 = vrot.lane.b32.xlu0 %v2055_v45, %s2261_s22  ;;  %v2452_v57 = vcombine.low %v488_v42, %v498_v52  ;;  %v459_v59 = vrot.slane %v458_v46, 4  ;;  %v467_v15 = vrot.slane %v465_v47, 4  ;;  %v473_v61 = vrot.slane %v471_v48, 5  ;;  %v2495_v52 = vld [vmem:[%s2311_s19 + $0x84] sm:$0xf] }
  0x2e   : > { %v308_v62 = vshrl.u32 %v2441_v49, 16  ;;  %v311_v63 = vshll.u32 %v2441_v49, 16  ;;  %v321_v2 = vshrl.u32 %v2444_v50, 16  ;;  %v2464_v9 = vcombine.low %v2427_v35, %v2432_v39 }
  0x2f   : > { %3539 = vst [vmem:[#allocation3_spill] sm:$0xff] %v2452_v57  ;;  %988 = vrot.lane.b32.xlu1 %v2452_v57, %s2261_s22  ;;  %v464_v7 = vsel %vm2388_vm5, %v459_v59, %v463_v44  ;;  %v468_v8 = vor.u32 %v467_v15, %v463_v44  ;;  %v502_v11 = vrot.slane %v500_v53, 4  ;;  %v505_v13 = vrot.slane %v503_v55, 5  ;;  %v2498_v53 = vld [vmem:[%s2311_s19 + $0x88] sm:$0xf] }
  0x30   : > { %v509_v17 = vshll.u32 %v2432_v39, 16  ;;  %v515_v18 = vrot.slane %v513_v56, 4  ;;  %v519_v19 = vshll.u32 %v233_v60, 16  ;;  %v310_v23 = vrot.slane %v308_v62, 4 }
  0x31   : > { %v469_v21 = vrot.slane %v468_v8, 4  ;;  %v313_v26 = vrot.slane %v311_v63, 5  ;;  %v317_v25 = vshll.u32 %v2444_v50, 16  ;;  %v506_v27 = vor.u32 %v505_v13, %v502_v11  ;;  %v2528_v13 = vld [vmem:[%s2311_s19 + $0x24] sm:$0xf] }
  0x32   : > { %v511_v28 = vrot.slane %v509_v17, 5  ;;  %v323_v0 = vrot.slane %v321_v2, 4  ;;  %v327_v32 = vshll.u32 %v2468_v20, 16  ;;  %v521_v34 = vrot.slane %v519_v19, 5  ;;  %v2531_v17 = vld [vmem:[%s2311_s19 + $0x28] sm:$0xf] }
  0x33   : > { %v474_v6 = vsel %vm2388_vm5, %v469_v21, %v473_v61  ;;  %1103 = vrot.lane.b32.xlu1 %v2464_v9, %s2259_s20  ;;  %v314_v29 = vor.u32 %v313_v26, %v310_v23  ;;  %v319_v30 = vrot.slane %v317_v25, 5  ;;  %v507_v33 = vrot.slane %v506_v27, 4  ;;  %v2534_v23 = vld [vmem:[%s2311_s19 + $0x8c] sm:$0x1] }
  0x34   : > { %v2476_v1 = vcombine.low %v464_v7, %v474_v6  ;;  %v516_v3 = vor.u32 %v515_v18, %v511_v28  ;;  %v766_v36 = vrot.slane %v2432_v39, 5  ;;  %v2483_v37 = vcombine.low %v2441_v49, %v2444_v50 }
  0x35   : > { %v324_v31 = vor.u32 %v323_v0, %v319_v30  ;;  %v512_v38 = vsel %vm2388_vm5, %v507_v33, %v511_v28  ;;  %v315_v42 = vrot.slane %v314_v29, 4  ;;  %v329_v44 = vrot.slane %v327_v32, 5 }
  0x36   : > { %986 = vrot.lane.b32.xlu0 %v2476_v1, %s2261_s22  ;;  %v517_v40 = vrot.slane %v516_v3, 4  ;;  %v2031_v39 = vrot.slane %v2427_v35, 9  ;;  %v768_v46 = vrot.slane %v766_v36, 4  ;;  %v769_v47 = vrot.slane %v233_v60, 5 }
  0x37   : > { %1136 = vrot.lane.b32.xlu1 %v2452_v57, %s2262_s23  ;;  %v325_v43 = vrot.slane %v324_v31, 4  ;;  %v320_v35 = vsel %vm2388_vm5, %v315_v42, %v319_v30  ;;  %v710_v59 = vrot.slane %v2444_v50, 5  ;;  %v524_v60 = vshrl.u32 %v2495_v52, 16  ;;  %v212_v42 = vld [vmem:[%s2311_s19 + $0x2c] sm:$0x1] }
  0x38   : > { %v522_v45 = vsel %vm2388_vm5, %v517_v40, %v521_v34  ;;  %v767_v56 = vsel %vm2343_vm4, %v2031_v39, %v766_v36  ;;  %v770_v15 = vsel %vm2343_vm4, %v768_v46, %v769_v47  ;;  %v527_v61 = vshll.u32 %v2495_v52, 16  ;;  %v2228_v46 = vld [vmem:[%s3524_s1] sm:$0xff]  }
  0x39   : > { %v2492_v48 = vcombine.low %v512_v38, %v522_v45  ;;  %v330_v55 = vsel %vm2388_vm5, %v325_v43, %v329_v44  ;;  %v537_v62 = vshrl.u32 %v2498_v53, 16  ;;  %v533_v63 = vshll.u32 %v2498_v53, 16  ;;  %2135 = vmatprep.subr.bf16.mxu0 %v2228_v46  ;;  %2173 = vmatprep.subr.bf16.mxu1 %v2228_v46 }
  0x3a   : > { %1087 = vrot.lane.b32.xlu0 %v2483_v37, %s2259_s20  ;;  %v2519_v2 = vcombine.low %v320_v35, %v330_v55  ;;  %v2023_v7 = vrot.slane %v2441_v49, 9  ;;  %v2524_v50 = vcombine.low %v767_v56, %v770_v15  ;;  %v712_v8 = vrot.slane %v710_v59, 4  ;;  %2136 = vmatpush3.bf16.msra.mxu0 %v2228_v46 }
  0x3b   : > { %1138 = vrot.lane.b32.xlu1 %v2492_v48, %s2262_s23  ;;  %v713_v11 = vrot.slane %v2468_v20, 5  ;;  %v526_v18 = vrot.slane %v524_v60, 4  ;;  %v529_v19 = vrot.slane %v527_v61, 5  ;;  %v539_v21 = vrot.slane %v537_v62, 4  ;;  %2176 = vmatpush3.bf16.msra.mxu1 %v2228_v46  ;;  %v2229_v60 = vld [vmem:[%s3524_s1 + $0x8] sm:$0xff]  }
  0x3c   : > { %v711_v49 = vsel %vm2343_vm4, %v2023_v7, %v710_v59  ;;  %v332_v26 = vshrl.u32 %v2528_v13, 16  ;;  %v335_v25 = vshll.u32 %v2528_v13, 16  ;;  %v345_v27 = vshrl.u32 %v2531_v17, 16  ;;  %2137 = vmatprep.subr.bf16.mxu0 %v2229_v60  ;;  %2174 = vmatprep.subr.bf16.mxu1 %v2229_v60 }
  0x3d   : > { %v714_v20 = vsel %vm2343_vm4, %v712_v8, %v713_v11  ;;  %v341_v28 = vshll.u32 %v2531_v17, 16  ;;  %v530_v0 = vor.u32 %v529_v19, %v526_v18  ;;  %v543_v29 = vshll.u32 %v2534_v23, 16 }
  0x3e   : > { %1120 = vrot.lane.b32.xlu0 %v2418_v5, %s2262_s23  ;;  %v535_v5 = vrot.slane %v533_v63, 5  ;;  %v2551_v30 = vcombine.low %v711_v49, %v714_v20  ;;  %v2555_v32 = vcombine.low %v2495_v52, %v2498_v53  ;;  %v334_v33 = vrot.slane %v332_v26, 4  ;;  %2138 = vmatpush3.bf16.msra.mxu0 %v2229_v60  ;;  %v2622_v49 = vld [vmem:[%s2311_s19 + $0x90] sm:$0xf]  ;;  %v2625_v26 = vld [vmem:[%s2311_s19 + $0x94] sm:$0xf] }
  0x3f   : > { %1171 = vrot.lane.b32.xlu1 %v2392_v54, %s2263_s24  ;;  %v337_v3 = vrot.slane %v335_v25, 5  ;;  %v343_v34 = vrot.slane %v341_v28, 5  ;;  %v347_v31 = vrot.slane %v345_v27, 4  ;;  %v531_v36 = vrot.slane %v530_v0, 4  ;;  %2177 = vmatpush3.bf16.msra.mxu1 %v2229_v60  ;;  %v2645_v0 = vld [vmem:[%s2311_s19 + $0x34] sm:$0xf] }
  0x40   : > { %v540_v6 = vor.u32 %v539_v21, %v535_v5  ;;  %v545_v40 = vrot.slane %v543_v29, 5  ;;  %v351_v44 = vshll.u32 %v212_v42, 16  ;;  %v2575_v47 = vcombine.low %v2528_v13, %v2531_v17  ;;  %v215_v60 = vld [vmem:[%s2311_s19 + $0x38] sm:$0x1] }
  0x41   : > { %v348_v43 = vor.u32 %v347_v31, %v343_v34  ;;  %v536_v39 = vsel %vm2388_vm5, %v531_v36, %v535_v5  ;;  %v773_v15 = vrot.slane %v2498_v53, 5  ;;  %v2032_v53 = vrot.slane %v2495_v52, 9 }
  0x42   : > { %1122 = vrot.lane.b32.xlu0 %v2519_v2, %s2262_s23  ;;  %v541_v38 = vrot.slane %v540_v6, 4  ;;  %3540 = vst [vmem:[#allocation4_spill] sm:$0xff] %v2575_v47  ;;  %v353_v59 = vrot.slane %v351_v44, 5  ;;  %v776_v7 = vrot.slane %v2534_v23, 5  ;;  %v717_v11 = vrot.slane %v2531_v17, 5 }
  0x43   : > { %1173 = vrot.lane.b32.xlu1 %v2524_v50, %s2263_s24  ;;  %v349_v56 = vrot.slane %v348_v43, 4  ;;  %v775_v63 = vrot.slane %v773_v15, 4  ;;  %v774_v52 = vsel %vm2343_vm4, %v2032_v53, %v773_v15  ;;  %v2024_v5 = vrot.slane %v2528_v13, 9  ;;  %v2232_v44 = vld [vmem:[%s3524_s1 + $0x10] ss:$0 sps:$4 sm:$0x33]  }
  0x44   : > { %v546_v45 = vsel %vm2388_vm5, %v541_v38, %v545_v40  ;;  %v719_v21 = vrot.slane %v717_v11, 4  ;;  %v720_v23 = vrot.slane %v212_v42, 5  ;;  %v548_v20 = vshrl.u32 %v2622_v49, 16  ;;  %2179 = vmatprep.subr.msk.bf16.mxu0 %vm1631_vm6, %v2232_v44  ;;  %2180 = vmatprep.subr.msk.bf16.mxu1 %vm1631_vm6, %v2232_v44 }
  0x45   : > { %v2579_v35 = vcombine.low %v536_v39, %v546_v45  ;;  %v354_v62 = vsel %vm2388_vm5, %v349_v56, %v353_v59  ;;  %v777_v18 = vsel %vm2343_vm4, %v775_v63, %v776_v7  ;;  %v718_v17 = vsel %vm2343_vm4, %v2024_v5, %v717_v11 }
  0x46   : > { %1155 = vrot.lane.b32.xlu0 %v2398_v58, %s2263_s24  ;;  %v338_v58 = vor.u32 %v337_v3, %v334_v33  ;;  %v2610_v19 = vcombine.low %v774_v52, %v777_v18  ;;  %v551_v25 = vshll.u32 %v2622_v49, 16  ;;  %v561_v27 = vshrl.u32 %v2625_v26, 16 }
  0x47   : > { %1206 = vrot.lane.b32.xlu1 %v2464_v9, %s2264_s25  ;;  %v557_v28 = vshll.u32 %v2625_v26, 16  ;;  %v550_v6 = vrot.slane %v548_v20, 4  ;;  %v365_v38 = vshll.u32 %v2645_v0, 16  ;;  %v2660_v43 = vcombine.low %v2622_v49, %v2625_v26  ;;  %v2689_v20 = vld [vmem:[%s2311_s19 + $0x9c] sm:$0xf] }
  0x48   : > { %v339_v55 = vrot.slane %v338_v58, 4  ;;  %v553_v29 = vrot.slane %v551_v25, 5  ;;  %v563_v3 = vrot.slane %v561_v27, 4  ;;  %v375_v53 = vshll.u32 %v215_v60, 16  ;;  %v2692_v25 = vld [vmem:[%s2311_s19 + $0xa0] sm:$0xf] }
  0x49   : > { %v559_v33 = vrot.slane %v557_v28, 5  ;;  %3541 = vst [vmem:[#allocation5_spill] sm:$0xff] %v2660_v43  ;;  %v367_v46 = vrot.slane %v365_v38, 5  ;;  %v780_v11 = vrot.slane %v2625_v26, 5  ;;  %v2033_v18 = vrot.slane %v2622_v49, 9 }
  0x4a   : > { %1157 = vrot.lane.b32.xlu0 %v2551_v30, %s2263_s24  ;;  %v344_v61 = vsel %vm2388_vm5, %v339_v55, %v343_v34  ;;  %v239_v34 = vld [vmem:[%s2311_s19 + $0x98] sm:$0x1]  ;;  %v554_v40 = vor.u32 %v553_v29, %v550_v6  ;;  %v724_v27 = vrot.slane %v2645_v0, 5  ;;  %v572_v6 = vshrl.u32 %v2689_v20, 16 }
  0x4b   : > { %1208 = vrot.lane.b32.xlu1 %v2555_v32, %s2264_s25  ;;  %v2597_v8 = vcombine.low %v344_v61, %v354_v62  ;;  %v564_v42 = vor.u32 %v563_v3, %v559_v33  ;;  %v567_v58 = vshll.u32 %v239_v34, 16  ;;  %v783_v26 = vrot.slane %v239_v34, 5 }
  0x4c   : > { %v555_v56 = vrot.slane %v554_v40, 4  ;;  %v781_v28 = vsel %vm2343_vm4, %v2033_v18, %v780_v11  ;;  %v581_v3 = vshll.u32 %v2692_v25, 16  ;;  %v2721_v40 = vld [vmem:[%s2311_s19 + $0x3c] sm:$0xf] }
  0x4d   : > { %v565_v59 = vrot.slane %v564_v42, 4  ;;  %v569_v15 = vrot.slane %v567_v58, 5  ;;  %v2724_v42 = vld [vmem:[%s2311_s19 + $0x40] sm:$0xf]  ;;  %v574_v58 = vrot.slane %v572_v6, 4 }
  0x4e   : > { %1190 = vrot.lane.b32.xlu0 %v2483_v37, %s2264_s25  ;;  %v560_v63 = vsel %vm2388_vm5, %v555_v56, %v559_v33  ;;  %v585_v33 = vshrl.u32 %v2692_v25, 16  ;;  %v393_v56 = vshrl.u32 %v2724_v42, 16 }
  0x4f   : > { %1241 = vrot.lane.b32.xlu1 %v2492_v48, %s2265_s28  ;;  %v570_v7 = vsel %vm2388_vm5, %v565_v59, %v569_v15  ;;  %v389_v59 = vshll.u32 %v2724_v42, 16 }
  0x50   : > { %v2686_v5 = vcombine.low %v560_v63, %v570_v7 }
  0x51   : > { %v391_v7 = vrot.slane %v389_v59, 5 }
  0x52   : > { %1192 = vrot.lane.b32.xlu0 %v2575_v47, %s2264_s25 }
  0x53   : > { %1243 = vrot.lane.b32.xlu1 %v2579_v35, %s2265_s28 }
  0x56   : > { %1225 = vrot.lane.b32.xlu0 %v2519_v2, %s2265_s28 }
  0x57   : > { %1276 = vrot.lane.b32.xlu1 %v2524_v50, %s2266_s4 }
  0x5a   : > { %1227 = vrot.lane.b32.xlu0 %v2597_v8, %s2265_s28 }
  0x5b   : > { %990 = vrot.lane.b32.xlu1 %v2492_v48, %s2261_s22  ;;  %v721_v48 = vsel %vm2343_vm4, %v719_v21, %v720_v23 }
  0x5c   : > { %v2629_v13 = vcombine.low %v718_v17, %v721_v48  ;;  %v377_v17 = vrot.slane %v375_v53, 5  ;;  %v782_v48 = vrot.slane %v780_v11, 4  ;;  %v395_v11 = vrot.slane %v393_v56, 4 }
  0x5e   : > { %1260 = vrot.lane.b32.xlu0 %v2551_v30, %s2266_s4  ;;  %v784_v29 = vsel %vm2343_vm4, %v782_v48, %v783_v26  ;;  %v396_v26 = vor.u32 %v395_v11, %v391_v7 }
  0x5f   : > { %1278 = vrot.lane.b32.xlu1 %v2610_v19, %s2266_s4  ;;  %v2718_v38 = vcombine.low %v781_v28, %v784_v29  ;;  %v2764_v28 = vcombine.low %v2721_v40, %v2724_v42 }
  0x61   : > { %3544 = vst [vmem:[#allocation8_spill] sm:$0xff] %v2764_v28 }
  0x62   : > { %974 = vrot.lane.b32.xlu0 %v2519_v2, %s2261_s22  ;;  %v2642_v2 = vld [vmem:[%s2311_s19 + $0x30] sm:$0xf] }
  0x63   : > { %992 = vrot.lane.b32.xlu1 %v2579_v35, %s2261_s22  ;;  %v356_v31 = vshrl.u32 %v2642_v2, 16  ;;  %v359_v36 = vshll.u32 %v2642_v2, 16  ;;  %v2681_v52 = vcombine.low %v2642_v2, %v2645_v0 }
  0x65   : > { %v358_v39 = vrot.slane %v356_v31, 4  ;;  %v361_v45 = vrot.slane %v359_v36, 5  ;;  %3542 = vst [vmem:[#allocation6_spill] sm:$0xff] %v2681_v52  ;;  %v2025_v31 = vrot.slane %v2642_v2, 9  ;;  %v726_v36 = vrot.slane %v724_v27, 4 }
  0x66   : > { %1262 = vrot.lane.b32.xlu0 %v2629_v13, %s2266_s4 }
  0x67   : > { %1070 = vrot.lane.b32.xlu1 %v2524_v50, %s2260_s21  ;;  %v369_v50 = vshrl.u32 %v2645_v0, 16  ;;  %v362_v61 = vor.u32 %v361_v45, %v358_v39  ;;  %v575_v0 = vshll.u32 %v2689_v20, 16  ;;  %v583_v39 = vrot.slane %v581_v3, 5 }
  0x68   : > { %v587_v45 = vrot.slane %v585_v33, 4  ;;  %v725_v2 = vsel %vm2343_vm4, %v2025_v31, %v724_v27  ;;  %v787_v31 = vrot.slane %v2692_v25, 5 }
  0x69   : > { %v371_v55 = vrot.slane %v369_v50, 4  ;;  %v363_v21 = vrot.slane %v362_v61, 4  ;;  %v727_v50 = vrot.slane %v215_v60, 5 }
  0x6a   : > { %976 = vrot.lane.b32.xlu0 %v2597_v8, %s2261_s22  ;;  %v588_v60 = vor.u32 %v587_v45, %v583_v39 }
  0x6b   : > { %1072 = vrot.lane.b32.xlu1 %v2610_v19, %s2260_s21  ;;  %v372_v62 = vor.u32 %v371_v55, %v367_v46  ;;  %v383_v55 = vshll.u32 %v2721_v40, 16 }
  0x6d   : > { %v373_v23 = vrot.slane %v372_v62, 4  ;;  %v2745_v62 = vcombine.low %v2689_v20, %v2692_v25  ;;  %v385_v63 = vrot.slane %v383_v55, 5 }
  0x6e   : > { %1054 = vrot.lane.b32.xlu0 %v2551_v30, %s2260_s21  ;;  %v1633_v30 = vsel %vm1631_vm6, %v2232_v44, 0  ;;  %v577_v44 = vrot.slane %v575_v0, 5  ;;  %v397_v0 = vrot.slane %v396_v26, 4 }
  0x6f   : > { %1105 = vrot.lane.b32.xlu1 %v2555_v32, %s2259_s20  ;;  %2140 = vmatpush3.bf16.msra.mxu0 %v1633_v30  ;;  %v378_v49 = vsel %vm2388_vm5, %v373_v23, %v377_v17  ;;  %3543 = vst [vmem:[#allocation7_spill] sm:$0xff] %v2745_v62  ;;  %v218_v17 = vld [vmem:[%s2311_s19 + $0x44] sm:$0x1] }
  0x70   : > { %2178 = vmatpush3.bf16.msra.mxu1 %v1633_v30  ;;  %v578_v15 = vor.u32 %v577_v44, %v574_v58  ;;  %v399_v27 = vshll.u32 %v218_v17, 16  ;;  %v2034_v44 = vrot.slane %v2689_v20, 9 }
  0x72   : > { %1056 = vrot.lane.b32.xlu0 %v2629_v13, %s2260_s21  ;;  %v579_v18 = vrot.slane %v578_v15, 4  ;;  %v401_v33 = vrot.slane %v399_v27, 5  ;;  %v788_v20 = vsel %vm2343_vm4, %v2034_v44, %v787_v31  ;;  %v734_v15 = vrot.slane %v218_v17, 5  ;;  %v2850_v27 = vld [vmem:[%s2311_s19 + $0x4c] sm:$0xf] }
  0x73   : > { %1107 = vrot.lane.b32.xlu1 %v2660_v43, %s2259_s20  ;;  %v413_v44 = vshll.u32 %v2850_v27, 16 }
  0x74   : > { %v402_v58 = vsel %vm2388_vm5, %v397_v0, %v401_v33 }
  0x76   : > { %1089 = vrot.lane.b32.xlu0 %v2575_v47, %s2259_s20 }
  0x77   : > { %1140 = vrot.lane.b32.xlu1 %v2579_v35, %s2262_s23  ;;  %v368_v35 = vsel %vm2388_vm5, %v363_v21, %v367_v46  ;;  %v380_v46 = vshrl.u32 %v2721_v40, 16  ;;  %v589_v21 = vrot.slane %v588_v60, 4 }
  0x78   : > { %v2713_v34 = vcombine.low %v368_v35, %v378_v49  ;;  %v584_v35 = vsel %vm2388_vm5, %v579_v18, %v583_v39  ;;  %v789_v39 = vrot.slane %v787_v31, 4  ;;  %v245_v31 = vld [vmem:[%s2311_s19 + $0xb0] sm:$0x1] }
  0x79   : > { %v382_v53 = vrot.slane %v380_v46, 4  ;;  %v731_v46 = vrot.slane %v2724_v42, 5  ;;  %v2026_v42 = vrot.slane %v2721_v40, 9  ;;  %v2821_v40 = vld [vmem:[%s2311_s19 + $0xa8] sm:$0xf] }
  0x7a   : > { %1091 = vrot.lane.b32.xlu0 %v2681_v52, %s2259_s20  ;;  %v596_v18 = vshrl.u32 %v2821_v40, 16 }
  0x7b   : > { %1142 = vrot.lane.b32.xlu1 %v2686_v5, %s2262_s23  ;;  %v386_v48 = vor.u32 %v385_v63, %v382_v53  ;;  %v733_v59 = vrot.slane %v731_v46, 4  ;;  %v2824_v63 = vld [vmem:[%s2311_s19 + $0xac] sm:$0xf] }
  0x7c   : > { %v605_v17 = vshll.u32 %v2824_v63, 16 }
  0x7d   : > { %v387_v29 = vrot.slane %v386_v48, 4 }
  0x7e   : > { %1124 = vrot.lane.b32.xlu0 %v2597_v8, %s2262_s23  ;;  %v242_v8 = vld [vmem:[%s2311_s19 + $0xa4] sm:$0x1] }
  0x7f   : > { %1175 = vrot.lane.b32.xlu1 %v2610_v19, %s2263_s24  ;;  %v728_v19 = vsel %vm2343_vm4, %v726_v36, %v727_v50  ;;  %v591_v30 = vshll.u32 %v242_v8, 16  ;;  %v392_v50 = vsel %vm2388_vm5, %v387_v29, %v391_v7  ;;  %v790_v45 = vrot.slane %v242_v8, 5 }
  0x80   : > { %v2741_v61 = vcombine.low %v725_v2, %v728_v19  ;;  %v2788_v25 = vcombine.low %v392_v50, %v402_v58  ;;  %v607_v29 = vrot.slane %v605_v17, 5  ;;  %v417_v58 = vshrl.u32 %v2850_v27, 16 }
  0x81   : > { %v593_v23 = vrot.slane %v591_v30, 5  ;;  %v791_v8 = vsel %vm2343_vm4, %v789_v39, %v790_v45  ;;  %v732_v30 = vsel %vm2343_vm4, %v2026_v42, %v731_v46  ;;  %v2871_v42 = vcombine.low %v2821_v40, %v2824_v63 }
  0x82   : > { %1126 = vrot.lane.b32.xlu0 %v2713_v34, %s2262_s23  ;;  %v2805_v56 = vcombine.low %v788_v20, %v791_v8  ;;  %v615_v20 = vshll.u32 %v245_v31, 16 }
  0x83   : > { %1177 = vrot.lane.b32.xlu1 %v2718_v38, %s2263_s24  ;;  %v594_v49 = vsel %vm2388_vm5, %v589_v21, %v593_v23  ;;  %v599_v21 = vshll.u32 %v2821_v40, 16  ;;  %v609_v23 = vshrl.u32 %v2824_v63, 16 }
  0x84   : > { %v2768_v6 = vcombine.low %v584_v35, %v594_v49  ;;  %v598_v35 = vrot.slane %v596_v18, 4  ;;  %v617_v17 = vrot.slane %v615_v20, 5 }
  0x85   : > { %v601_v49 = vrot.slane %v599_v21, 5  ;;  %v611_v0 = vrot.slane %v609_v23, 4 }
  0x86   : > { %1159 = vrot.lane.b32.xlu0 %v2629_v13, %s2263_s24 }
  0x87   : > { %1210 = vrot.lane.b32.xlu1 %v2660_v43, %s2264_s25  ;;  %v602_v45 = vor.u32 %v601_v49, %v598_v35  ;;  %v612_v46 = vor.u32 %v611_v0, %v607_v29  ;;  %v2878_v35 = vld [vmem:[%s2311_s19 + $0x50] sm:$0x1] }
  0x89   : > { %v2754_v13 = vpop.permute.xlu1 %1101  ;;  %v603_v21 = vrot.slane %v602_v45, 4  ;;  %v613_v23 = vrot.slane %v612_v46, 4  ;;  %v794_v45 = vrot.slane %v2824_v63, 5 }
  0x8a   : > { %1161 = vrot.lane.b32.xlu0 %v2741_v61, %s2263_s24 }
  0x8b   : > { %1212 = vrot.lane.b32.xlu1 %v2745_v62, %s2264_s25  ;;  %v2770_v3 = vpop.permute.xlu0 %1085 }
  0x8e   : > { %1194 = vrot.lane.b32.xlu0 %v2681_v52, %s2264_s25  ;;  %v2915_v52 = vld [vmem:[%s2311_s19 + $0xb8] sm:$0xf] }
  0x8f   : > { %1245 = vrot.lane.b32.xlu1 %v2686_v5, %s2265_s28 }
  0x91   : > { %v2773_v36 = vpop.permute.xlu1 %1066 }
  0x92   : > { %1196 = vrot.lane.b32.xlu0 %v2764_v28, %s2264_s25 }
  0x93   : > { %1247 = vrot.lane.b32.xlu1 %v2768_v6, %s2265_s28  ;;  %v2790_v19 = vpop.permute.xlu0 %1050 }
  0x95   : > { %v2784_v2 = vpop.permute.xlu1 %1068 }
  0x96   : > { %1229 = vrot.lane.b32.xlu0 %v2713_v34, %s2265_s28 }
  0x97   : > { %1280 = vrot.lane.b32.xlu1 %v2718_v38, %s2266_s4  ;;  %v2808_v60 = vpop.permute.xlu0 %1052 }
  0x9a   : > { %1231 = vrot.lane.b32.xlu0 %v2788_v25, %s2265_s28  ;;  %v2803_v55 = vpop.permute.xlu1 %972 }
  0x9b   : > { %994 = vrot.lane.b32.xlu1 %v2686_v5, %s2261_s22  ;;  %v735_v5 = vsel %vm2343_vm4, %v733_v59, %v734_v15 }
  0x9c   : > { %v2830_v11 = vcombine.low %v732_v30, %v735_v5  ;;  %v415_v30 = vrot.slane %v413_v44, 5  ;;  %v419_v5 = vrot.slane %v417_v58, 4  ;;  %v608_v58 = vsel %vm2388_vm5, %v603_v21, %v607_v29 }
  0x9d   : > { %v618_v44 = vsel %vm2388_vm5, %v613_v23, %v617_v17  ;;  %v796_v23 = vrot.slane %v794_v45, 4  ;;  %v797_v17 = vrot.slane %v245_v31, 5 }
  0x9e   : > { %1264 = vrot.lane.b32.xlu0 %v2741_v61, %s2266_s4  ;;  %v420_v0 = vor.u32 %v419_v5, %v415_v30  ;;  %v2905_v29 = vcombine.low %v608_v58, %v618_v44  ;;  %v633_v58 = vshrl.u32 %v2915_v52, 16 }
  0x9f   : > { %1282 = vrot.lane.b32.xlu1 %v2805_v56, %s2266_s4  ;;  %v2828_v7 = vpop.permute.xlu0 %970 }
  0xa0   : > { %v421_v5 = vrot.slane %v420_v0, 4 }
  0xa1   : > { %v2818_v53 = vpop.permute.xlu1 %988 }
  0xa2   : > { %978 = vrot.lane.b32.xlu0 %v2713_v34, %s2261_s22  ;;  %v2845_v34 = vld [vmem:[%s2311_s19 + $0x48] sm:$0xf] }
  0xa3   : > { %996 = vrot.lane.b32.xlu1 %v2768_v6, %s2261_s22  ;;  %v407_v50 = vshll.u32 %v2845_v34, 16  ;;  %v2900_v20 = vcombine.low %v2845_v34, %v2850_v27 }
  0xa5   : > { %v2838_v48 = vpop.permute.xlu1 %1103  ;;  %v409_v15 = vrot.slane %v407_v50, 5 }
  0xa6   : > { %1266 = vrot.lane.b32.xlu0 %v2830_v11, %s2266_s4 }
  0xa7   : > { %1074 = vrot.lane.b32.xlu1 %v2718_v38, %s2260_s21  ;;  %v404_v38 = vshrl.u32 %v2845_v34, 16 }
  0xa8   : > { %v2847_v26 = vpop.permute.xlu0 %986 }
  0xa9   : > { %v2852_v33 = vpop.permute.xlu1 %1136  ;;  %v406_v59 = vrot.slane %v404_v38, 4  ;;  %v423_v38 = vshll.u32 %v2878_v35, 16 }
  0xaa   : > { %980 = vrot.lane.b32.xlu0 %v2788_v25, %s2261_s22 }
  0xab   : > { %1076 = vrot.lane.b32.xlu1 %v2805_v56, %s2260_s21  ;;  %v425_v21 = vrot.slane %v423_v38, 5 }
  0xac   : > { %v2863_v39 = vpop.permute.xlu0 %1087 }
  0xad   : > { %v2865_v8 = vpop.permute.xlu1 %1138 }
  0xae   : > { %1058 = vrot.lane.b32.xlu0 %v2741_v61, %s2260_s21  ;;  %v410_v61 = vor.u32 %v409_v15, %v406_v59  ;;  %v2035_v59 = vrot.slane %v2821_v40, 9  ;;  %v2919_v40 = vcombine.low %v2331_v12, %v2336_v14 }
  0xaf   : > { %1109 = vrot.lane.b32.xlu1 %v2745_v62, %s2259_s20  ;;  %v2910_v62 = vld [vmem:[%s2311_s19 + $0xb4] sm:$0xf] }
  0xb0   : > { %v2875_v18 = vpop.permute.xlu0 %1120  ;;  %v411_v15 = vrot.slane %v410_v61, 4  ;;  %v426_v61 = vsel %vm2388_vm5, %v421_v5, %v425_v21  ;;  %v795_v0 = vsel %vm2343_vm4, %v2035_v59, %v794_v45  ;;  %v620_v12 = vshrl.u32 %v2910_v62, 16 }
  0xb1   : > { %v2880_v49 = vpop.permute.xlu1 %1171  ;;  %v623_v38 = vshll.u32 %v2910_v62, 16  ;;  %v741_v5 = vrot.slane %v2878_v35, 5  ;;  %v2039_v21 = vcombine.low %v2353_v22, %v2356_v24  ;;  %v635_v22 = vrot.slane %v633_v58, 4 }
  0xb2   : > { %1060 = vrot.lane.b32.xlu0 %v2830_v11, %s2260_s21  ;;  %v416_v31 = vsel %vm2388_vm5, %v411_v15, %v415_v30  ;;  %v629_v30 = vshll.u32 %v2915_v52, 16  ;;  %v2027_v15 = vrot.slane %v2845_v34, 9  ;;  %v622_v35 = vrot.slane %v620_v12, 4 }
  0xb3   : > { %1111 = vrot.lane.b32.xlu1 %v2871_v42, %s2259_s20  ;;  %v2945_v45 = vcombine.low %v416_v31, %v426_v61  ;;  %v2963_v31 = vld [vmem:[%s2311_s19 + $0x58] sm:$0xf]  ;;  %v625_v61 = vrot.slane %v623_v38, 5  ;;  %v2994_v57 = vcombine.low %v2910_v62, %v2915_v52  ;;  %v1295_v47 = vsel %vm1292_vm7, %v2039_v21, %v2828_v7 }
  0xb4   : > { %v2887_v50 = vpop.permute.xlu0 %1122  ;;  %v2965_v43 = vrot.slane %v629_v30, 5  ;;  %v437_v58 = vshll.u32 %v2963_v31, 16 }
  0xb5   : > { %v2894_v46 = vpop.permute.xlu1 %1173  ;;  %v626_v30 = vor.u32 %v625_v61, %v622_v35 }
  0xb6   : > { %1093 = vrot.lane.b32.xlu0 %v2764_v28, %s2259_s20 }
  0xb7   : > { %1144 = vrot.lane.b32.xlu1 %v2768_v6, %s2262_s23  ;;  %v738_v6 = vrot.slane %v2850_v27, 5  ;;  %v798_v27 = vsel %vm2343_vm4, %v796_v23, %v797_v17  ;;  %v1319_v23 = vsel %vm1292_vm7, %v2919_v40, %v2847_v26  ;;  %v2958_v17 = vld [vmem:[%s2311_s19 + $0x54] sm:$0xf]  ;;  %v2970_v26 = vld [vmem:[%s2311_s19 + $0xbc] sm:$0x1] }
  0xb8   : > { %v2907_v63 = vpop.permute.xlu0 %1155  ;;  %v2955_v34 = vcombine.low %v795_v0, %v798_v27  ;;  %v1359_v0 = vsel %vm1341_vm8, %v1319_v23, %v2773_v36  ;;  %v428_v27 = vshrl.u32 %v2958_v17, 16  ;;  %v431_v38 = vshll.u32 %v2958_v17, 16 }
  0xb9   : > { %v2912_v28 = vpop.permute.xlu1 %1206  ;;  %v740_v59 = vrot.slane %v738_v6, 4 }
  0xba   : > { %1095 = vrot.lane.b32.xlu0 %v2900_v20, %s2259_s20  ;;  %v430_v61 = vrot.slane %v428_v27, 4 }
  0xbb   : > { %1146 = vrot.lane.b32.xlu1 %v2905_v29, %s2262_s23  ;;  %v742_v12 = vsel %vm2343_vm4, %v740_v59, %v741_v5  ;;  %v639_v59 = vshll.u32 %v2970_v26, 16  ;;  %v1392_v5 = vsel %vm1374_vm9, %v1359_v0, %v2754_v13  ;;  %v3009_v0 = vrot.slane %v437_v58, 5 }
  0xbc   : > { %v2933_v14 = vpop.permute.xlu0 %1157  ;;  %v1425_v35 = vsel %vm1407_vm10, %v1392_v5, %v2852_v33 }
  0xbd   : > { %v2940_v44 = vpop.permute.xlu1 %1208  ;;  %v1458_v13 = vsel %vm1440_vm11, %v1425_v35, %v2880_v49  ;;  %v641_v27 = vrot.slane %v639_v59, 5  ;;  %v1322_v49 = vsel %vm1292_vm7, %v2323_v4, %v2818_v53 }
  0xbe   : > { %1128 = vrot.lane.b32.xlu0 %v2788_v25, %s2262_s23  ;;  %v1491_v33 = vsel %vm1473_vm12, %v1458_v13, %v2912_v28 }
  0xbf   : > { %1179 = vrot.lane.b32.xlu1 %v2805_v56, %s2263_s24  ;;  %v739_v56 = vsel %vm2343_vm4, %v2027_v15, %v738_v6  ;;  %v441_v6 = vshrl.u32 %v2963_v31, 16  ;;  %v636_v15 = vor.u32 %v635_v22, %v2965_v43  ;;  %v433_v22 = vrot.slane %v431_v38, 5 }
  0xc0   : > { %v2960_v25 = vpop.permute.xlu0 %1190  ;;  %v2990_v23 = vcombine.low %v739_v56, %v742_v12  ;;  %v3007_v56 = vld [vmem:[%s2311_s19 + $0x5c] sm:$0x1]  ;;  %v627_v12 = vrot.slane %v626_v30, 4  ;;  %v1343_v38 = vsel %vm1341_vm8, %v1295_v47, %v2790_v19  ;;  %v1361_v19 = vsel %vm1341_vm8, %v1322_v49, %v2784_v2 }
  0xc1   : > { %v1242_v24 = vpop.permute.xlu1 %1241  ;;  %v443_v7 = vrot.slane %v441_v6, 4  ;;  %v434_v28 = vor.u32 %v433_v22, %v430_v61  ;;  %v447_v58 = vshll.u32 %v3007_v56, 16  ;;  %v1376_v53 = vsel %vm1374_vm9, %v1343_v38, %v2770_v3 }
  0xc2   : > { %1130 = vrot.lane.b32.xlu0 %v2945_v45, %s2262_s23  ;;  %v1524_v5 = vsel %vm1506_vm13, %v1491_v33, %v1242_v24  ;;  %v632_v30 = vsel %vm2388_vm5, %v627_v12, %v2965_v43  ;;  %v1394_v59 = vsel %vm1374_vm9, %v1361_v19, %v2838_v48  ;;  %v1409_v61 = vsel %vm1407_vm10, %v1376_v53, %v2875_v18 }
  0xc3   : > { %1181 = vrot.lane.b32.xlu1 %v2955_v34, %s2263_s24  ;;  %v444_v47 = vor.u32 %v443_v7, %v3009_v0  ;;  %v3042_v2 = vcombine.low %v2958_v17, %v2963_v31  ;;  %v1427_v3 = vsel %vm1407_vm10, %v1394_v59, %v2865_v8  ;;  %v1442_v43 = vsel %vm1440_vm11, %v1409_v61, %v2907_v63 }
  0xc4   : > { %v2984_v36 = vpop.permute.xlu0 %1192  ;;  %v435_v13 = vrot.slane %v434_v28, 4  ;;  %v449_v48 = vrot.slane %v447_v58, 5  ;;  %v1460_v18 = vsel %vm1440_vm11, %v1427_v3, %v2894_v46  ;;  %v1475_v7 = vsel %vm1473_vm12, %v1442_v43, %v2960_v25  ;;  %v250_v43 = vld [vmem:[%s2311_s19 + $0xc4] sm:$0xf] }
  0xc5   : > { %v1244_v54 = vpop.permute.xlu1 %1243  ;;  %v445_v8 = vrot.slane %v444_v47, 4  ;;  %v1298_v63 = vsel %vm1292_vm7, %v2328_v10, %v2803_v55  ;;  %v1493_v12 = vsel %vm1473_vm12, %v1460_v18, %v2940_v44  ;;  %v801_v46 = vrot.slane %v2915_v52, 5 }
  0xc6   : > { %1163 = vrot.lane.b32.xlu0 %v2830_v11, %s2263_s24  ;;  %v637_v11 = vrot.slane %v636_v15, 4  ;;  %v1526_v25 = vsel %vm1506_vm13, %v1493_v12, %v1244_v54  ;;  %v1345_v55 = vsel %vm1341_vm8, %v1298_v63, %v2808_v60  ;;  %v440_v54 = vsel %vm2388_vm5, %v435_v13, %v3009_v0 }
  0xc7   : > { %1214 = vrot.lane.b32.xlu1 %v2871_v42, %s2264_s25  ;;  %v450_v52 = vsel %vm2388_vm5, %v445_v8, %v449_v48  ;;  %v1378_v44 = vsel %vm1374_vm9, %v1345_v55, %v2863_v39  ;;  %v803_v60 = vrot.slane %v801_v46, 4  ;;  %v820_v8 = vshrl.u32 %v250_v43, 16 }
  0xc8   : > { %v1226_v21 = vpop.permute.xlu0 %1225  ;;  %v642_v15 = vsel %vm2388_vm5, %v637_v11, %v641_v27  ;;  %v3097_v58 = vcombine.low %v440_v54, %v450_v52  ;;  %v816_v63 = vshll.u32 %v250_v43, 16 }
  0xc9   : > { %v1277_v35 = vpop.permute.xlu1 %1276  ;;  %v3058_v33 = vcombine.low %v632_v30, %v642_v15  ;;  %v1508_v11 = vsel %vm1506_vm13, %v1475_v7, %v1226_v21  ;;  %v748_v30 = vrot.slane %v3007_v56, 5  ;;  %v249_v56 = vld [vmem:[%s2311_s19 + $0xc0] sm:$0xf] }
  0xca   : > { %1165 = vrot.lane.b32.xlu0 %v2990_v23, %s2263_s24  ;;  %v1557_v6 = vsel %vm1539_vm14, %v1524_v5, %v1277_v35  ;;  %v2036_v5 = vrot.slane %v2910_v62, 9  ;;  %v804_v35 = vrot.slane %v2970_v26, 5  ;;  %v745_v62 = vrot.slane %v2963_v31, 5 }
  0xcb   : > { %1216 = vrot.lane.b32.xlu1 %v2994_v57, %s2264_s25  ;;  %2157 = vmatprep.mubr.msk.bf16.mxu1 %vm1598_vm15, %v1557_v6  ;;  %v1411_v6 = vsel %vm1407_vm10, %v1378_v44, %v2887_v50  ;;  %v807_v18 = vshrl.u32 %v249_v56, 16  ;;  %v810_v7 = vshll.u32 %v249_v56, 16  ;;  %v2087_v44 = vcombine.low %v249_v56, %v250_v43 }
  0xcc   : > { %v1228_v24 = vpop.permute.xlu0 %1227  ;;  %v1444_v0 = vsel %vm1440_vm11, %v1411_v6, %v2933_v14  ;;  %v802_v47 = vsel %vm2343_vm4, %v2036_v5, %v801_v46  ;;  %v805_v14 = vsel %vm2343_vm4, %v803_v60, %v804_v35  ;;  %v818_v46 = vrot.slane %v816_v63, 5 }
  0xcd   : > { %v3044_v22 = vpop.permute.xlu1 %990  ;;  %v1477_v39 = vsel %vm1473_vm12, %v1444_v0, %v2984_v36  ;;  %v3117_v31 = vcombine.low %v802_v47, %v805_v14  ;;  %v2028_v36 = vrot.slane %v2958_v17, 9 }
  0xce   : > { %1198 = vrot.lane.b32.xlu0 %v2900_v20, %s2264_s25  ;;  %v1510_v50 = vsel %vm1506_vm13, %v1477_v39, %v1228_v24  ;;  %v747_v24 = vrot.slane %v745_v62, 4 }
  0xcf   : > { %1249 = vrot.lane.b32.xlu1 %v2905_v29, %s2265_s28 }
  0xd0   : > { %v1261_v27 = vpop.permute.xlu0 %1260  ;;  %v749_v61 = vsel %vm2343_vm4, %v747_v24, %v748_v30  ;;  %v3192_v30 = vld [vmem:[%s2311_s19 + $0xcc] sm:$0xf] }
  0xd1   : > { %v1541_v38 = vsel %vm1539_vm14, %v1508_v11, %v1261_v27  ;;  %v1279_v49 = vpop.permute.xlu1 %1278  ;;  %v809_v11 = vrot.slane %v807_v18, 4  ;;  %v812_v27 = vrot.slane %v810_v7, 5 }
  0xd2   : > { %1200 = vrot.lane.b32.xlu0 %v3042_v2, %s2264_s25  ;;  %2141 = vmatprep.mubr.msk.bf16.mxu0 %vm1598_vm15, %v1541_v38  ;;  %v1559_v10 = vsel %vm1539_vm14, %v1526_v25, %v1279_v49  ;;  %v822_v25 = vrot.slane %v820_v8, 4  ;;  %v251_v49 = vld [vmem:[%s2311_s19 + $0xc8] sm:$0x1] }
  0xd3   : > { %1251 = vrot.lane.b32.xlu1 %v3058_v33, %s2265_s28  ;;  %2158 = vmatmul.mubr.msk.bf16.vlgmr.msra.gmra.mrb[0].mxu1 %vm1598_vm15, %v1559_v10  ;;  %v813_v55 = vor.u32 %v812_v27, %v809_v11  ;;  %v838_v24 = vrot.slane %v251_v49, 5 }
  0xd4   : > { %v3085_v21 = vpop.permute.xlu0 %974  ;;  %v823_v54 = vor.u32 %v822_v25, %v818_v46 }
  0xd5   : > { %v3091_v28 = vpop.permute.xlu1 %992  ;;  %v814_v60 = vrot.slane %v813_v55, 4 }
  0xd6   : > { %1233 = vrot.lane.b32.xlu0 %v2945_v45, %s2265_s28  ;;  %v824_v35 = vrot.slane %v823_v54, 4 }
  0xd7   : > { %1284 = vrot.lane.b32.xlu1 %v2955_v34, %s2266_s4 }
  0xd8   : > { %v1263_v26 = vpop.permute.xlu0 %1262 }
  0xd9   : > { %v1543_v19 = vsel %vm1539_vm14, %v1510_v50, %v1263_v26  ;;  %v3110_v53 = vpop.permute.xlu1 %1070  ;;  %v835_v50 = vrot.slane %v250_v43, 5  ;;  %v844_v43 = vshll.u32 %v3192_v30, 16 }
  0xda   : > { %1235 = vrot.lane.b32.xlu0 %v3097_v58, %s2265_s28  ;;  %2142 = vmatmul.mubr.msk.bf16.vlgmr.msra.gmra.mrb[0].mxu0 %vm1598_vm15, %v1543_v19  ;;  %v2037_v19 = vrot.slane %v249_v56, 9 }
  0xdb   : > { %998 = vrot.lane.b32.xlu1 %v2905_v29, %s2261_s22  ;;  %v746_v29 = vsel %vm2343_vm4, %v2028_v36, %v745_v62  ;;  %v837_v36 = vrot.slane %v835_v50, 4  ;;  %v846_v25 = vrot.slane %v844_v43, 5 }
  0xdc   : > { %v3121_v15 = vpop.permute.xlu0 %976  ;;  %v3141_v13 = vcombine.low %v746_v29, %v749_v61  ;;  %v3195_v61 = vld [vmem:[%s2311_s19 + $0xd0] sm:$0xf]  ;;  %v836_v56 = vsel %vm2343_vm4, %v2037_v19, %v835_v50 }
  0xdd   : > { %v3123_v59 = vpop.permute.xlu1 %1072  ;;  %v839_v7 = vsel %vm2343_vm4, %v837_v36, %v838_v24  ;;  %v854_v8 = vshrl.u32 %v3195_v61, 16  ;;  %v850_v63 = vshll.u32 %v3195_v61, 16 }
  0xde   : > { %1268 = vrot.lane.b32.xlu0 %v2990_v23, %s2266_s4  ;;  %v3215_v27 = vcombine.low %v836_v56, %v839_v7 }
  0xdf   : > { %1286 = vrot.lane.b32.xlu1 %v3117_v31, %s2266_s4  ;;  %v852_v55 = vrot.slane %v850_v63, 5  ;;  %v856_v54 = vrot.slane %v854_v8, 4 }
  0xe0   : > { %v3133_v17 = vpop.permute.xlu0 %1054 }
  0xe1   : > { %v3135_v3 = vpop.permute.xlu1 %1105 }
  0xe2   : > { %982 = vrot.lane.b32.xlu0 %v2945_v45, %s2261_s22 }
  0xe3   : > { %1000 = vrot.lane.b32.xlu1 %v3058_v33, %s2261_s22 }
  0xe4   : > { %v3145_v48 = vpop.permute.xlu0 %1056 }
  0xe5   : > { %v3147_v12 = vpop.permute.xlu1 %1107 }
  0xe6   : > { %1270 = vrot.lane.b32.xlu0 %v3141_v13, %s2266_s4 }
  0xe7   : > { %1078 = vrot.lane.b32.xlu1 %v2955_v34, %s2260_s21  ;;  %v826_v34 = vshll.u32 %v251_v49, 16 }
  0xe8   : > { %v3153_v45 = vpop.permute.xlu0 %1089 }
  0xe9   : > { %v3155_v38 = vpop.permute.xlu1 %1140  ;;  %v828_v6 = vrot.slane %v826_v34, 5 }
  0xea   : > { %984 = vrot.lane.b32.xlu0 %v3097_v58, %s2261_s22 }
  0xeb   : > { %1080 = vrot.lane.b32.xlu1 %v3117_v31, %s2260_s21  ;;  %v829_v62 = vsel %vm2388_vm5, %v824_v35, %v828_v6 }
  0xec   : > { %v3162_v10 = vpop.permute.xlu0 %1091 }
  0xed   : > { %v3164_v52 = vpop.permute.xlu1 %1142 }
  0xee   : > { %1062 = vrot.lane.b32.xlu0 %v2990_v23, %s2260_s21  ;;  %v819_v23 = vsel %vm2388_vm5, %v814_v60, %v818_v46  ;;  %v3218_v60 = vld [vmem:[%s2311_s19 + $0xd4] sm:$0x1] }
  0xef   : > { %1113 = vrot.lane.b32.xlu1 %v2994_v57, %s2259_s20  ;;  %v3187_v47 = vcombine.low %v819_v23, %v829_v62  ;;  %v857_v23 = vor.u32 %v856_v54, %v852_v55  ;;  %v860_v62 = vshll.u32 %v3218_v60, 16  ;;  %v872_v54 = vrot.slane %v3218_v60, 5 }
  0xf0   : > { %v3170_v5 = vpop.permute.xlu0 %1124 }
  0xf1   : > { %v1176_v0 = vpop.permute.xlu1 %1175  ;;  %v858_v43 = vrot.slane %v857_v23, 4 }
  0xf2   : > { %1064 = vrot.lane.b32.xlu0 %v3141_v13, %s2260_s21 }
  0xf3   : > { %1115 = vrot.lane.b32.xlu1 %v2087_v44, %s2259_s20 }
  0xf4   : > { %v3175_v39 = vpop.permute.xlu0 %1126 }
  0xf5   : > { %v3181_v26 = vpop.permute.xlu1 %1177 }
  0xf6   : > { %1097 = vrot.lane.b32.xlu0 %v3042_v2, %s2259_s20 }
  0xf7   : > { %1148 = vrot.lane.b32.xlu1 %v3058_v33, %s2262_s23  ;;  %v841_v33 = vshrl.u32 %v3192_v30, 16 }
  0xf8   : > { %v3189_v14 = vpop.permute.xlu0 %1159 }
  0xf9   : > { %v1211_v29 = vpop.permute.xlu1 %1210  ;;  %v843_v46 = vrot.slane %v841_v33, 4 }
  0xfa   : > { %1099 = vrot.lane.b32.xlu0 %v2919_v40, %s2259_s20 }
  0xfb   : > { %1150 = vrot.lane.b32.xlu1 %v3187_v47, %s2262_s23 }
  0xfc   : > { %v3203_v18 = vpop.permute.xlu0 %1161 }
  0xfd   : > { %v1213_v11 = vpop.permute.xlu1 %1212 }
  0xfe   : > { %1132 = vrot.lane.b32.xlu0 %v3097_v58, %s2262_s23  ;;  %v1325_v58 = vsel %vm1292_vm7, %v2464_v9, %v3044_v22  ;;  %v2090_v22 = vcombine.low %v3192_v30, %v3195_v61 }
  0xff   : > { %1183 = vrot.lane.b32.xlu1 %v3117_v31, %s2263_s24  ;;  %v847_v31 = vor.u32 %v846_v25, %v843_v46  ;;  %v1363_v35 = vsel %vm1341_vm8, %v1325_v58, %v3110_v53 }
 0x100   : > { %v1195_v49 = vpop.permute.xlu0 %1194  ;;  %v1396_v50 = vsel %vm1374_vm9, %v1363_v35, %v3135_v3  ;;  %v862_v3 = vrot.slane %v860_v62, 5 }
 0x101   : > { %v1246_v34 = vpop.permute.xlu1 %1245  ;;  %v1429_v36 = vsel %vm1407_vm10, %v1396_v50, %v3155_v38  ;;  %v848_v53 = vrot.slane %v847_v31, 4 }
 0x102   : > { %1134 = vrot.lane.b32.xlu0 %v2476_v1, %s2262_s23  ;;  %v1462_v9 = vsel %vm1440_vm11, %v1429_v36, %v1176_v0  ;;  %v3547_v36 = vld [vmem:[#allocation2_spill] sm:$0xff] }
 0x103   : > { %1185 = vrot.lane.b32.xlu1 %v3215_v27, %s2263_s24  ;;  %v1495_v24 = vsel %vm1473_vm12, %v1462_v9, %v1211_v29  ;;  %v853_v29 = vsel %vm2388_vm5, %v848_v53, %v852_v55 }
 0x104   : > { %v3229_v6 = vpop.permute.xlu0 %1196  ;;  %v1528_v56 = vsel %vm1506_vm13, %v1495_v24, %v1246_v34 }
 0x105   : > { %v1248_v19 = vpop.permute.xlu1 %1247 }
 0x106   : > { %1167 = vrot.lane.b32.xlu0 %v3141_v13, %s2263_s24  ;;  %v1301_v13 = vsel %vm1292_vm7, %v2483_v37, %v3085_v21 }
 0x107   : > { %1218 = vrot.lane.b32.xlu1 %v2087_v44, %s2264_s25  ;;  %v1328_v44 = vsel %vm1292_vm7, %v2555_v32, %v3091_v28  ;;  %v1347_v0 = vsel %vm1341_vm8, %v1301_v13, %v3133_v17  ;;  %v863_v32 = vsel %vm2388_vm5, %v858_v43, %v862_v3  ;;  %v869_v28 = vrot.slane %v3195_v61, 5 }
 0x108   : > { %v1230_v33 = vpop.permute.xlu0 %1229  ;;  %v1365_v37 = vsel %vm1341_vm8, %v1328_v44, %v3123_v59  ;;  %v1380_v21 = vsel %vm1374_vm9, %v1347_v0, %v3153_v45 }
 0x109   : > { %v1281_v7 = vpop.permute.xlu1 %1280  ;;  %v1398_v17 = vsel %vm1374_vm9, %v1365_v37, %v3147_v12  ;;  %v1413_v63 = vsel %vm1407_vm10, %v1380_v21, %v3170_v5  ;;  %v2091_v12 = vcombine.low %v853_v29, %v863_v32  ;;  %v2038_v5 = vrot.slane %v3192_v30, 9  ;;  %v3548_v21 = vld [vmem:[#allocation5_spill] sm:$0xff] }
 0x10a   : > { %1169 = vrot.lane.b32.xlu0 %v2374_v41, %s2263_s24  ;;  %v1561_v38 = vsel %vm1539_vm14, %v1528_v56, %v1281_v7  ;;  %v1431_v59 = vsel %vm1407_vm10, %v1398_v17, %v3164_v52  ;;  %v1446_v45 = vsel %vm1440_vm11, %v1413_v63, %v3189_v14  ;;  %v871_v14 = vrot.slane %v869_v28, 4 }
 0x10b   : > { %1220 = vrot.lane.b32.xlu1 %v2090_v22, %s2264_s25  ;;  %2161 = vmatprep.mubr.msk.bf16.mxu1 %vm1598_vm15, %v1561_v38  ;;  %v1464_v51 = vsel %vm1440_vm11, %v1431_v59, %v3181_v26  ;;  %v1479_v61 = vsel %vm1473_vm12, %v1446_v45, %v1195_v49  ;;  %v3545_v49 = vld [vmem:[#allocation4_spill] sm:$0xff] }
 0x10c   : > { %v1232_v8 = vpop.permute.xlu0 %1231  ;;  %v1497_v25 = vsel %vm1473_vm12, %v1464_v51, %v1213_v11  ;;  %v1512_v52 = vsel %vm1506_vm13, %v1479_v61, %v1230_v33 }
 0x10d   : > { %v3270_v46 = vpop.permute.xlu1 %994 }
 0x10e   : > { %1202 = vrot.lane.b32.xlu0 %v2919_v40, %s2264_s25  ;;  %v1530_v40 = vsel %vm1506_vm13, %v1497_v25, %v1248_v19  ;;  %v3546_v19 = vld [vmem:[#allocation3_spill] sm:$0xff]  ;;  %v3549_v25 = vld [vmem:[#allocation6_spill] sm:$0xff] }
 0x10f   : > { %1253 = vrot.lane.b32.xlu1 %v3187_v47, %s2265_s28  ;;  %v1304_v47 = vsel %vm1292_vm7, %v3545_v49, %v3121_v15  ;;  %v870_v15 = vsel %vm2343_vm4, %v2038_v5, %v869_v28 }
 0x110   : > { %v1265_v55 = vpop.permute.xlu0 %1264  ;;  %v1349_v11 = vsel %vm1341_vm8, %v1304_v47, %v3145_v48 }
 0x111   : > { %v1545_v26 = vsel %vm1539_vm14, %v1512_v52, %v1265_v55  ;;  %v1283_v34 = vpop.permute.xlu1 %1282  ;;  %v1382_v60 = vsel %vm1374_vm9, %v1349_v11, %v3162_v10  ;;  %v3550_v55 = vld [vmem:[#allocation7_spill] sm:$0xff] }
 0x112   : > { %1204 = vrot.lane.b32.xlu0 %v2323_v4, %s2264_s25  ;;  %2145 = vmatprep.mubr.msk.bf16.mxu0 %vm1598_vm15, %v1545_v26  ;;  %v1563_v30 = vsel %vm1539_vm14, %v1530_v40, %v1283_v34  ;;  %v873_v4 = vsel %vm2343_vm4, %v871_v14, %v872_v54  ;;  %v1415_v31 = vsel %vm1407_vm10, %v1382_v60, %v3175_v39 }
 0x113   : > { %1255 = vrot.lane.b32.xlu1 %v2091_v12, %s2265_s28  ;;  %2162 = vmatmul.mubr.msk.bf16.gmra.mrb[4].mxu1 %vm1598_vm15, %v1563_v30  ;;  %v1448_v48 = vsel %vm1440_vm11, %v1415_v31, %v3203_v18  ;;  %v2092_v23 = vcombine.low %v870_v15, %v873_v4 }
 0x114   : > { %v979_v58 = vpop.permute.xlu0 %978  ;;  %v1481_v10 = vsel %vm1473_vm12, %v1448_v48, %v3229_v6 }
 0x115   : > { %v997_v35 = vpop.permute.xlu1 %996  ;;  %v1514_v16 = vsel %vm1506_vm13, %v1481_v10, %v1232_v8  ;;  %v1331_v8 = vsel %vm1292_vm7, %v3548_v21, %v3270_v46  ;;  %v1307_v52 = vsel %vm1292_vm7, %v3549_v25, %v979_v58 }
 0x116   : > { %1237 = vrot.lane.b32.xlu0 %v2476_v1, %s2265_s28  ;;  %v1334_v14 = vsel %vm1292_vm7, %v3550_v55, %v997_v35 }
 0x117   : > { %1288 = vrot.lane.b32.xlu1 %v3215_v27, %s2266_s4 }
 0x118   : > { %v1267_v62 = vpop.permute.xlu0 %1266 }
 0x119   : > { %v1547_v50 = vsel %vm1539_vm14, %v1514_v16, %v1267_v62  ;;  %v1075_v39 = vpop.permute.xlu1 %1074  ;;  %v3551_v16 = vld [vmem:[#allocation8_spill] sm:$0xff] }
 0x11a   : > { %1239 = vrot.lane.b32.xlu0 %v3546_v19, %s2265_s28  ;;  %2146 = vmatmul.mubr.msk.bf16.gmra.mrb[4].mxu0 %vm1598_vm15, %v1547_v50  ;;  %v1367_v32 = vsel %vm1341_vm8, %v1331_v8, %v1075_v39 }
 0x11b   : > { %1290 = vrot.lane.b32.xlu1 %v2092_v23, %s2266_s4 }
 0x11c   : > { %v981_v1 = vpop.permute.xlu0 %980 }
 0x11d   : > { %v1077_v18 = vpop.permute.xlu1 %1076  ;;  %v1310_v62 = vsel %vm1292_vm7, %v3551_v16, %v981_v1 }
 0x11e   : > { %1272 = vrot.lane.b32.xlu0 %v2374_v41, %s2266_s4  ;;  %v1369_v40 = vsel %vm1341_vm8, %v1334_v14, %v1077_v18 }
 0x120   : > { %v1059_v27 = vpop.permute.xlu0 %1058 }
 0x121   : > { %v1110_v6 = vpop.permute.xlu1 %1109  ;;  %v1351_v54 = vsel %vm1341_vm8, %v1307_v52, %v1059_v27 }
 0x122   : > { %1274 = vrot.lane.b32.xlu0 %v3547_v36, %s2266_s4  ;;  %v1400_v17 = vsel %vm1374_vm9, %v1367_v32, %v1110_v6 }
 0x124   : > { %v1061_v9 = vpop.permute.xlu0 %1060 }
 0x125   : > { %v1112_v22 = vpop.permute.xlu1 %1111  ;;  %v1353_v39 = vsel %vm1341_vm8, %v1310_v62, %v1061_v9 }
 0x126   : > { %v1402_v49 = vsel %vm1374_vm9, %v1369_v40, %v1112_v22 }
 0x128   : > { %v1094_v53 = vpop.permute.xlu0 %1093 }
 0x129   : > { %v1145_v24 = vpop.permute.xlu1 %1144  ;;  %v1384_v26 = vsel %vm1374_vm9, %v1351_v54, %v1094_v53 }
 0x12a   : > { %v1433_v59 = vsel %vm1407_vm10, %v1400_v17, %v1145_v24 }
 0x12c   : > { %v1096_v33 = vpop.permute.xlu0 %1095 }
 0x12d   : > { %v1147_v43 = vpop.permute.xlu1 %1146  ;;  %v1386_v19 = vsel %vm1374_vm9, %v1353_v39, %v1096_v33 }
 0x12e   : > { %v1435_v11 = vsel %vm1407_vm10, %v1402_v49, %v1147_v43 }
 0x130   : > { %v1129_v3 = vpop.permute.xlu0 %1128 }
 0x131   : > { %v1180_v56 = vpop.permute.xlu1 %1179  ;;  %v1417_v47 = vsel %vm1407_vm10, %v1384_v26, %v1129_v3 }
 0x132   : > { %v1466_v45 = vsel %vm1440_vm11, %v1433_v59, %v1180_v56 }
 0x134   : > { %v1131_v7 = vpop.permute.xlu0 %1130 }
 0x135   : > { %v1182_v13 = vpop.permute.xlu1 %1181  ;;  %v1419_v27 = vsel %vm1407_vm10, %v1386_v19, %v1131_v7 }
 0x136   : > { %v1468_v58 = vsel %vm1440_vm11, %v1435_v11, %v1182_v13 }
 0x138   : > { %v1164_v38 = vpop.permute.xlu0 %1163 }
 0x139   : > { %v1215_v44 = vpop.permute.xlu1 %1214  ;;  %v1450_v60 = vsel %vm1440_vm11, %v1417_v47, %v1164_v38 }
 0x13a   : > { %v1499_v51 = vsel %vm1473_vm12, %v1466_v45, %v1215_v44 }
 0x13c   : > { %v1166_v0 = vpop.permute.xlu0 %1165 }
 0x13d   : > { %v1217_v29 = vpop.permute.xlu1 %1216  ;;  %v1452_v36 = vsel %vm1440_vm11, %v1419_v27, %v1166_v0 }
 0x13e   : > { %v1501_v4 = vsel %vm1473_vm12, %v1468_v58, %v1217_v29 }
 0x140   : > { %v1199_v41 = vpop.permute.xlu0 %1198 }
 0x141   : > { %v1250_v37 = vpop.permute.xlu1 %1249  ;;  %v1483_v15 = vsel %vm1473_vm12, %v1450_v60, %v1199_v41 }
 0x142   : > { %v1532_v12 = vsel %vm1506_vm13, %v1499_v51, %v1250_v37 }
 0x144   : > { %v1201_v28 = vpop.permute.xlu0 %1200 }
 0x145   : > { %v1252_v63 = vpop.permute.xlu1 %1251  ;;  %v1485_v22 = vsel %vm1473_vm12, %v1452_v36, %v1201_v28 }
 0x146   : > { %v1534_v48 = vsel %vm1506_vm13, %v1501_v4, %v1252_v63 }
 0x148   : > { %v1234_v61 = vpop.permute.xlu0 %1233 }
 0x149   : > { %v1285_v5 = vpop.permute.xlu1 %1284  ;;  %v1516_v31 = vsel %vm1506_vm13, %v1483_v15, %v1234_v61 }
 0x14a   : > { %v1565_v46 = vsel %vm1539_vm14, %v1532_v12, %v1285_v5 }
 0x14b   : > { %2165 = vmatprep.mubr.msk.bf16.mxu1 %vm1598_vm15, %v1565_v46 }
 0x14c   : > { %v1236_v34 = vpop.permute.xlu0 %1235 }
 0x14d   : > { %v999_v30 = vpop.permute.xlu1 %998  ;;  %v1518_v1 = vsel %vm1506_vm13, %v1485_v22, %v1236_v34 }
 0x14e   : > { %v1337_v51 = vsel %vm1292_vm7, %v2871_v42, %v999_v30 }
 0x150   : > { %v1269_v35 = vpop.permute.xlu0 %1268 }
 0x151   : > { %v1549_v10 = vsel %vm1539_vm14, %v1516_v31, %v1269_v35  ;;  %v1287_v23 = vpop.permute.xlu1 %1286 }
 0x152   : > { %2149 = vmatprep.mubr.msk.bf16.mxu0 %vm1598_vm15, %v1549_v10  ;;  %v1567_v50 = vsel %vm1539_vm14, %v1534_v48, %v1287_v23 }
 0x153   : > { %2166 = vmatmul.mubr.msk.bf16.gmra.mrb[8].mxu1 %vm1598_vm15, %v1567_v50 }
 0x154   : > { %v983_v18 = vpop.permute.xlu0 %982 }
 0x155   : > { %v1001_v6 = vpop.permute.xlu1 %1000  ;;  %v1313_v49 = vsel %vm1292_vm7, %v2900_v20, %v983_v18 }
 0x156   : > { %v1340_v46 = vsel %vm1292_vm7, %v2994_v57, %v1001_v6 }
 0x158   : > { %v1271_v53 = vpop.permute.xlu0 %1270 }
 0x159   : > { %v1551_v24 = vsel %vm1539_vm14, %v1518_v1, %v1271_v53  ;;  %v1079_v43 = vpop.permute.xlu1 %1078  ;;  %v3410_v1 = vld [vmem:[%s3525_s2] ss:$0 sm:$0xff] }
 0x15a   : > { %2150 = vmatmul.mubr.msk.bf16.gmra.mrb[8].mxu0 %vm1598_vm15, %v1551_v24  ;;  %v1371_v61 = vsel %vm1341_vm8, %v1337_v51, %v1079_v43 }
 0x15c   : > { %v985_v9 = vpop.permute.xlu0 %984 }
 0x15d   : > { %v1081_v3 = vpop.permute.xlu1 %1080  ;;  %v1316_v35 = vsel %vm1292_vm7, %v3042_v2, %v985_v9 }
 0x15e   : > { %v1373_v14 = vsel %vm1341_vm8, %v1340_v46, %v1081_v3 }
 0x160   : > { %v1063_v56 = vpop.permute.xlu0 %1062 }
 0x161   : > { %v1114_v33 = vpop.permute.xlu1 %1113  ;;  %v1355_v57 = vsel %vm1341_vm8, %v1313_v49, %v1063_v56 }
 0x162   : > { %v1404_v5 = vsel %vm1374_vm9, %v1371_v61, %v1114_v33 }
 0x164   : > { %v1065_v13 = vpop.permute.xlu0 %1064 }
 0x165   : > { %v1116_v38 = vpop.permute.xlu1 %1115  ;;  %v1357_v23 = vsel %vm1341_vm8, %v1316_v35, %v1065_v13 }
 0x166   : > { %v1406_v42 = vsel %vm1374_vm9, %v1373_v14, %v1116_v38 }
 0x168   : > { %v1098_v7 = vpop.permute.xlu0 %1097 }
 0x169   : > { %v1149_v44 = vpop.permute.xlu1 %1148  ;;  %v1388_v60 = vsel %vm1374_vm9, %v1355_v57, %v1098_v7 }
 0x16a   : > { %v1437_v52 = vsel %vm1407_vm10, %v1404_v5, %v1149_v44 }
 0x16c   : > { %v1100_v29 = vpop.permute.xlu0 %1099 }
 0x16d   : > { %v1151_v0 = vpop.permute.xlu1 %1150  ;;  %v1390_v62 = vsel %vm1374_vm9, %v1357_v23, %v1100_v29 }
 0x16e   : > { %v1439_v47 = vsel %vm1407_vm10, %v1406_v42, %v1151_v0 }
 0x170   : > { %v1133_v41 = vpop.permute.xlu0 %1132 }
 0x171   : > { %v1184_v37 = vpop.permute.xlu1 %1183  ;;  %v1421_v4 = vsel %vm1407_vm10, %v1388_v60, %v1133_v41 }
 0x172   : > { %v1470_v55 = vsel %vm1440_vm11, %v1437_v52, %v1184_v37 }
 0x174   : > { %v1135_v21 = vpop.permute.xlu0 %1134 }
 0x175   : > { %v1186_v8 = vpop.permute.xlu1 %1185  ;;  %v1423_v19 = vsel %vm1407_vm10, %v1390_v62, %v1135_v21 }
 0x176   : > { %v1472_v11 = vsel %vm1440_vm11, %v1439_v47, %v1186_v8 }
 0x178   : > { %v1168_v32 = vpop.permute.xlu0 %1167 }
 0x179   : > { %v1219_v28 = vpop.permute.xlu1 %1218  ;;  %v1454_v48 = vsel %vm1440_vm11, %v1421_v4, %v1168_v32 }
 0x17a   : > { %v1503_v54 = vsel %vm1473_vm12, %v1470_v55, %v1219_v28 }
 0x17c   : > { %v1170_v17 = vpop.permute.xlu0 %1169 }
 0x17d   : > { %v1221_v63 = vpop.permute.xlu1 %1220  ;;  %v1456_v18 = vsel %vm1440_vm11, %v1423_v19, %v1170_v17 }
 0x17e   : > { %v1505_v58 = vsel %vm1473_vm12, %v1472_v11, %v1221_v63 }
 0x180   : > { %v1203_v59 = vpop.permute.xlu0 %1202 }
 0x181   : > { %v1254_v45 = vpop.permute.xlu1 %1253  ;;  %v1487_v16 = vsel %vm1473_vm12, %v1454_v48, %v1203_v59 }
 0x182   : > { %v1536_v26 = vsel %vm1506_vm13, %v1503_v54, %v1254_v45 }
 0x184   : > { %v1205_v12 = vpop.permute.xlu0 %1204 }
 0x185   : > { %v1256_v25 = vpop.permute.xlu1 %1255  ;;  %v1489_v27 = vsel %vm1473_vm12, %v1456_v18, %v1205_v12 }
 0x186   : > { %v1538_v31 = vsel %vm1506_vm13, %v1505_v58, %v1256_v25 }
 0x188   : > { %v1238_v40 = vpop.permute.xlu0 %1237 }
 0x189   : > { %v1289_v34 = vpop.permute.xlu1 %1288  ;;  %v1520_v50 = vsel %vm1506_vm13, %v1487_v16, %v1238_v40 }
 0x18a   : > { %v1569_v30 = vsel %vm1539_vm14, %v1536_v26, %v1289_v34 }
 0x18b   : > { %2169 = vmatprep.mubr.msk.bf16.mxu1 %vm1598_vm15, %v1569_v30 }
 0x18c   : > { %v1240_v15 = vpop.permute.xlu0 %1239 }
 0x18d   : > { %v1291_v20 = vpop.permute.xlu1 %1290  ;;  %v1522_v6 = vsel %vm1506_vm13, %v1489_v27, %v1240_v15 }
 0x18e   : > { %v1571_v10 = vsel %vm1539_vm14, %v1538_v31, %v1291_v20 }
 0x18f   : > { %2170 = vmatmul.mubr.msk.bf16.gmra.mrb[12].mxu1 %vm1598_vm15, %v1571_v10 }
 0x190   : > { %v1273_v39 = vpop.permute.xlu0 %1272 }
 0x191   : > { %v1553_v2 = vsel %vm1539_vm14, %v1520_v50, %v1273_v39 }
 0x192   : > { %2153 = vmatprep.mubr.msk.bf16.mxu0 %vm1598_vm15, %v1553_v2 }
 0x194   : > { %v1275_v36 = vpop.permute.xlu0 %1274 }
 0x195   : > { %v1555_v22 = vsel %vm1539_vm14, %v1522_v6, %v1275_v36 }
 0x196   : > { %2154 = vmatmul.mubr.msk.bf16.gmra.mrb[12].mxu0 %vm1598_vm15, %v1555_v22 }
 0x1a6   : > { %v2159_v53 = vpop.f32.mrb[0].mxu1 }
 0x1a7   : > { %v1742_v24 = vadd.f32 %v2159_v53, %v3410_v1  ;;  %v1733_v43 = vpop.f32.mrb[1].mxu1 }
 0x1a8   : > { %v1734_v9 = vadd.f32 %v3410_v1, %v1733_v43  ;;  %v2160_v3 = vpop.f32.mrb[2].mxu1 }
 0x1a9   : > { %vm1814_vm0 = vcmp.gt.f32.partialorder %v1742_v24, 0.0  ;;  %v1846_v56 = vmul.f32 0.01, %v1742_v24  ;;  %v1745_v33 = vadd.f32 %v2160_v3, %v3410_v1  ;;  %v1736_v13 = vpop.f32.mrb[3].mxu1 }
 0x1aa   : > { %vm1812_vm1 = vcmp.gt.f32.partialorder %v1734_v9, 0.0  ;;  %v1844_v38 = vmul.f32 0.01, %v1734_v9  ;;  %v1737_v7 = vadd.f32 %v3410_v1, %v1736_v13 }
 0x1ab   : > { %v1878_v44 = vsel %vm1814_vm0, %v1742_v24, %v1846_v56  ;;  %vm1815_vm2 = vcmp.gt.f32.partialorder %v1745_v33, 0.0  ;;  %v1847_v29 = vmul.f32 0.01, %v1745_v33 }
 0x1ac   : > { %1910 = vst.msk [vmem:[%s3418_s16 + $0x90] sm:$0xff] %vm1539_vm14, %v1878_v44  ;;  %v1876_v0 = vsel %vm1812_vm1, %v1734_v9, %v1844_v38  ;;  %vm1813_vm3 = vcmp.gt.f32.partialorder %v1737_v7, 0.0  ;;  %v1845_v41 = vmul.f32 0.01, %v1737_v7 }
 0x1ad   : > { %v2143_v37 = vpop.f32.mrb[0].mxu0  ;;  %1908 = vst.msk [vmem:[%s3418_s16 + $0x80] sm:$0xff] %vm1539_vm14, %v1876_v0  ;;  %v1879_v21 = vsel %vm1815_vm2, %v1745_v33, %v1847_v29 }
 0x1ae   : > { %v1678_v8 = vadd.f32 %v2143_v37, %v3410_v1  ;;  %v1669_v32 = vpop.f32.mrb[1].mxu0  ;;  %1911 = vst.msk [vmem:[%s3418_s16 + $0x98] sm:$0xff] %vm1539_vm14, %v1879_v21  ;;  %v1877_v28 = vsel %vm1813_vm3, %v1737_v7, %v1845_v41 }
 0x1af   : > { %v1670_v17 = vadd.f32 %v3410_v1, %v1669_v32  ;;  %v2144_v63 = vpop.f32.mrb[2].mxu0  ;;  %1909 = vst.msk [vmem:[%s3418_s16 + $0x88] sm:$0xff] %vm1539_vm14, %v1877_v28 }
 0x1b0   : > { %vm1798_vm4 = vcmp.gt.f32.partialorder %v1678_v8, 0.0  ;;  %v1830_v59 = vmul.f32 0.01, %v1678_v8  ;;  %v1681_v45 = vadd.f32 %v2144_v63, %v3410_v1  ;;  %v1672_v51 = vpop.f32.mrb[3].mxu0 }
 0x1b1   : > { %vm1796_vm5 = vcmp.gt.f32.partialorder %v1670_v17, 0.0  ;;  %v1828_v61 = vmul.f32 0.01, %v1670_v17  ;;  %v1673_v12 = vadd.f32 %v3410_v1, %v1672_v51 }
 0x1b2   : > { %v1862_v5 = vsel %vm1798_vm4, %v1678_v8, %v1830_v59  ;;  %vm1799_vm6 = vcmp.gt.f32.partialorder %v1681_v45, 0.0  ;;  %v1831_v25 = vmul.f32 0.01, %v1681_v45 }
 0x1b3   : > { %1894 = vst.msk [vmem:[%s3418_s16 + $0x10] sm:$0xff] %vm1539_vm14, %v1862_v5  ;;  %v1860_v52 = vsel %vm1796_vm5, %v1670_v17, %v1828_v61  ;;  %vm1797_vm7 = vcmp.gt.f32.partialorder %v1673_v12, 0.0  ;;  %v1829_v46 = vmul.f32 0.01, %v1673_v12 }
 0x1b4   : > { %1892 = vst.msk [vmem:[%s3418_s16] sm:$0xff] %vm1539_vm14, %v1860_v52  ;;  %v1863_v55 = vsel %vm1799_vm6, %v1681_v45, %v1831_v25 }
 0x1b5   : > { %1895 = vst.msk [vmem:[%s3418_s16 + $0x18] sm:$0xff] %vm1539_vm14, %v1863_v55  ;;  %v1861_v14 = vsel %vm1797_vm7, %v1673_v12, %v1829_v46 }
 0x1b6   : > { %1893 = vst.msk [vmem:[%s3418_s16 + $0x8] sm:$0xff] %vm1539_vm14, %v1861_v14 }
 0x1e6   : > { %v2163_v54 = vpop.f32.mrb[4].mxu1 }
 0x1e7   : > { %v1758_v40 = vadd.f32 %v2163_v54, %v3410_v1  ;;  %v1749_v42 = vpop.f32.mrb[5].mxu1 }
 0x1e8   : > { %v1750_v26 = vadd.f32 %v3410_v1, %v1749_v42  ;;  %v2164_v34 = vpop.f32.mrb[6].mxu1 }
 0x1e9   : > { %vm1818_vm8 = vcmp.gt.f32.partialorder %v1758_v40, 0.0  ;;  %v1850_v49 = vmul.f32 0.01, %v1758_v40  ;;  %v1761_v47 = vadd.f32 %v2164_v34, %v3410_v1  ;;  %v1752_v30 = vpop.f32.mrb[7].mxu1 }
 0x1ea   : > { %vm1816_vm9 = vcmp.gt.f32.partialorder %v1750_v26, 0.0  ;;  %v1848_v57 = vmul.f32 0.01, %v1750_v26  ;;  %v1753_v11 = vadd.f32 %v3410_v1, %v1752_v30 }
 0x1eb   : > { %v1882_v60 = vsel %vm1818_vm8, %v1758_v40, %v1850_v49  ;;  %vm1819_vm10 = vcmp.gt.f32.partialorder %v1761_v47, 0.0  ;;  %v1851_v58 = vmul.f32 0.01, %v1761_v47 }
 0x1ec   : > { %1914 = vst.msk [vmem:[%s3418_s16 + $0xb0] sm:$0xff] %vm1539_vm14, %v1882_v60  ;;  %v1880_v15 = vsel %vm1816_vm9, %v1750_v26, %v1848_v57  ;;  %vm1817_vm11 = vcmp.gt.f32.partialorder %v1753_v11, 0.0  ;;  %v1849_v4 = vmul.f32 0.01, %v1753_v11 }
 0x1ed   : > { %v2147_v31 = vpop.f32.mrb[4].mxu0  ;;  %1912 = vst.msk [vmem:[%s3418_s16 + $0xa0] sm:$0xff] %vm1539_vm14, %v1880_v15  ;;  %v1883_v20 = vsel %vm1819_vm10, %v1761_v47, %v1851_v58 }
 0x1ee   : > { %v1694_v35 = vadd.f32 %v2147_v31, %v3410_v1  ;;  %v1685_v48 = vpop.f32.mrb[5].mxu0  ;;  %1915 = vst.msk [vmem:[%s3418_s16 + $0xb8] sm:$0xff] %vm1539_vm14, %v1883_v20  ;;  %v1881_v10 = vsel %vm1817_vm11, %v1753_v11, %v1849_v4 }
 0x1ef   : > { %v1686_v23 = vadd.f32 %v3410_v1, %v1685_v48  ;;  %v2148_v16 = vpop.f32.mrb[6].mxu0  ;;  %1913 = vst.msk [vmem:[%s3418_s16 + $0xa8] sm:$0xff] %vm1539_vm14, %v1881_v10 }
 0x1f0   : > { %vm1802_vm12 = vcmp.gt.f32.partialorder %v1694_v35, 0.0  ;;  %v1834_v62 = vmul.f32 0.01, %v1694_v35  ;;  %v1697_v50 = vadd.f32 %v2148_v16, %v3410_v1  ;;  %v1688_v39 = vpop.f32.mrb[7].mxu0 }
 0x1f1   : > { %vm1800_vm13 = vcmp.gt.f32.partialorder %v1686_v23, 0.0  ;;  %v1832_v19 = vmul.f32 0.01, %v1686_v23  ;;  %v1689_v2 = vadd.f32 %v3410_v1, %v1688_v39 }
 0x1f2   : > { %v1866_v18 = vsel %vm1802_vm12, %v1694_v35, %v1834_v62  ;;  %vm1803_vm15 = vcmp.gt.f32.partialorder %v1697_v50, 0.0  ;;  %v1835_v27 = vmul.f32 0.01, %v1697_v50 }
 0x1f3   : > { %1898 = vst.msk [vmem:[%s3418_s16 + $0x30] sm:$0xff] %vm1539_vm14, %v1866_v18  ;;  %v1864_v6 = vsel %vm1800_vm13, %v1686_v23, %v1832_v19  ;;  %vm1801_vm0 = vcmp.gt.f32.partialorder %v1689_v2, 0.0  ;;  %v1833_v36 = vmul.f32 0.01, %v1689_v2 }
 0x1f4   : > { %1896 = vst.msk [vmem:[%s3418_s16 + $0x20] sm:$0xff] %vm1539_vm14, %v1864_v6  ;;  %v1867_v22 = vsel %vm1803_vm15, %v1697_v50, %v1835_v27 }
 0x1f5   : > { %1899 = vst.msk [vmem:[%s3418_s16 + $0x38] sm:$0xff] %vm1539_vm14, %v1867_v22  ;;  %v1865_v53 = vsel %vm1801_vm0, %v1689_v2, %v1833_v36 }
 0x1f6   : > { %1897 = vst.msk [vmem:[%s3418_s16 + $0x28] sm:$0xff] %vm1539_vm14, %v1865_v53 }
 0x226   : > { %v2167_v24 = vpop.f32.mrb[8].mxu1 }
 0x227   : > { %v1774_v43 = vadd.f32 %v2167_v24, %v3410_v1  ;;  %v1765_v9 = vpop.f32.mrb[9].mxu1 }
 0x228   : > { %v1766_v3 = vadd.f32 %v3410_v1, %v1765_v9  ;;  %v2168_v56 = vpop.f32.mrb[10].mxu1 }
 0x229   : > { %vm1822_vm1 = vcmp.gt.f32.partialorder %v1774_v43, 0.0  ;;  %v1854_v33 = vmul.f32 0.01, %v1774_v43  ;;  %v1777_v13 = vadd.f32 %v2168_v56, %v3410_v1  ;;  %v1768_v38 = vpop.f32.mrb[11].mxu1 }
 0x22a   : > { %vm1820_vm2 = vcmp.gt.f32.partialorder %v1766_v3, 0.0  ;;  %v1852_v7 = vmul.f32 0.01, %v1766_v3  ;;  %v1769_v44 = vadd.f32 %v3410_v1, %v1768_v38 }
 0x22b   : > { %v1886_v29 = vsel %vm1822_vm1, %v1774_v43, %v1854_v33  ;;  %vm1823_vm3 = vcmp.gt.f32.partialorder %v1777_v13, 0.0  ;;  %v1855_v0 = vmul.f32 0.01, %v1777_v13 }
 0x22c   : > { %1918 = vst.msk [vmem:[%s3418_s16 + $0xd0] sm:$0xff] %vm1539_vm14, %v1886_v29  ;;  %v1884_v41 = vsel %vm1820_vm2, %v1766_v3, %v1852_v7  ;;  %vm1821_vm4 = vcmp.gt.f32.partialorder %v1769_v44, 0.0  ;;  %v1853_v37 = vmul.f32 0.01, %v1769_v44 }
 0x22d   : > { %v2151_v21 = vpop.f32.mrb[8].mxu0  ;;  %1916 = vst.msk [vmem:[%s3418_s16 + $0xc0] sm:$0xff] %vm1539_vm14, %v1884_v41  ;;  %v1887_v8 = vsel %vm1823_vm3, %v1777_v13, %v1855_v0 }
 0x22e   : > { %v1710_v32 = vadd.f32 %v2151_v21, %v3410_v1  ;;  %v1701_v28 = vpop.f32.mrb[9].mxu0  ;;  %1919 = vst.msk [vmem:[%s3418_s16 + $0xd8] sm:$0xff] %vm1539_vm14, %v1887_v8  ;;  %v1885_v17 = vsel %vm1821_vm4, %v1769_v44, %v1853_v37 }
 0x22f   : > { %v1702_v63 = vadd.f32 %v3410_v1, %v1701_v28  ;;  %v2152_v59 = vpop.f32.mrb[10].mxu0  ;;  %1917 = vst.msk [vmem:[%s3418_s16 + $0xc8] sm:$0xff] %vm1539_vm14, %v1885_v17 }
 0x230   : > { %vm1806_vm5 = vcmp.gt.f32.partialorder %v1710_v32, 0.0  ;;  %v1838_v45 = vmul.f32 0.01, %v1710_v32  ;;  %v1713_v51 = vadd.f32 %v2152_v59, %v3410_v1  ;;  %v1704_v61 = vpop.f32.mrb[11].mxu0 }
 0x231   : > { %vm1804_vm6 = vcmp.gt.f32.partialorder %v1702_v63, 0.0  ;;  %v1836_v12 = vmul.f32 0.01, %v1702_v63  ;;  %v1705_v5 = vadd.f32 %v3410_v1, %v1704_v61 }
 0x232   : > { %v1870_v25 = vsel %vm1806_vm5, %v1710_v32, %v1838_v45  ;;  %vm1807_vm7 = vcmp.gt.f32.partialorder %v1713_v51, 0.0  ;;  %v1839_v52 = vmul.f32 0.01, %v1713_v51 }
 0x233   : > { %1902 = vst.msk [vmem:[%s3418_s16 + $0x50] sm:$0xff] %vm1539_vm14, %v1870_v25  ;;  %v1868_v46 = vsel %vm1804_vm6, %v1702_v63, %v1836_v12  ;;  %vm1805_vm8 = vcmp.gt.f32.partialorder %v1705_v5, 0.0  ;;  %v1837_v55 = vmul.f32 0.01, %v1705_v5 }
 0x234   : > { %1900 = vst.msk [vmem:[%s3418_s16 + $0x40] sm:$0xff] %vm1539_vm14, %v1868_v46  ;;  %v1871_v14 = vsel %vm1807_vm7, %v1713_v51, %v1839_v52 }
 0x235   : > { %1903 = vst.msk [vmem:[%s3418_s16 + $0x58] sm:$0xff] %vm1539_vm14, %v1871_v14  ;;  %v1869_v54 = vsel %vm1805_vm8, %v1705_v5, %v1837_v55 }
 0x236   : > { %1901 = vst.msk [vmem:[%s3418_s16 + $0x48] sm:$0xff] %vm1539_vm14, %v1869_v54 }
 0x262   : > { %v2171_v40 = vpop.f32.mrb[12].mxu1 }
 0x263   : > { %v1790_v42 = vadd.f32 %v2171_v40, %v3410_v1  ;;  %v1781_v26 = vpop.f32.mrb[13].mxu1 }
 0x264   : > { %v1782_v34 = vadd.f32 %v3410_v1, %v1781_v26  ;;  %v2172_v49 = vpop.f32.mrb[14].mxu1 }
 0x265   : > { %vm1826_vm9 = vcmp.gt.f32.partialorder %v1790_v42, 0.0  ;;  %v1858_v47 = vmul.f32 0.01, %v1790_v42  ;;  %v1793_v30 = vadd.f32 %v2172_v49, %v3410_v1  ;;  %v1784_v57 = vpop.f32.mrb[15].mxu1 }
 0x266   : > { %vm1824_vm10 = vcmp.gt.f32.partialorder %v1782_v34, 0.0  ;;  %v1856_v11 = vmul.f32 0.01, %v1782_v34  ;;  %v1785_v60 = vadd.f32 %v3410_v1, %v1784_v57 }
 0x267   : > { %v1890_v58 = vsel %vm1826_vm9, %v1790_v42, %v1858_v47  ;;  %vm1827_vm11 = vcmp.gt.f32.partialorder %v1793_v30, 0.0  ;;  %v1859_v15 = vmul.f32 0.01, %v1793_v30 }
 0x268   : > { %1922 = vst.msk [vmem:[%s3418_s16 + $0xf0] sm:$0xff] %vm1539_vm14, %v1890_v58  ;;  %v1888_v4 = vsel %vm1824_vm10, %v1782_v34, %v1856_v11  ;;  %vm1825_vm12 = vcmp.gt.f32.partialorder %v1785_v60, 0.0  ;;  %v1857_v31 = vmul.f32 0.01, %v1785_v60 }
 0x269   : > { %v2155_v20 = vpop.f32.mrb[12].mxu0  ;;  %1920 = vst.msk [vmem:[%s3418_s16 + $0xe0] sm:$0xff] %vm1539_vm14, %v1888_v4  ;;  %v1891_v35 = vsel %vm1827_vm11, %v1793_v30, %v1859_v15 }
 0x26a   : > { %v1726_v48 = vadd.f32 %v2155_v20, %v3410_v1  ;;  %v1717_v10 = vpop.f32.mrb[13].mxu0  ;;  %1923 = vst.msk [vmem:[%s3418_s16 + $0xf8] sm:$0xff] %vm1539_vm14, %v1891_v35  ;;  %v1889_v23 = vsel %vm1825_vm12, %v1785_v60, %v1857_v31 }
 0x26b   : > { %v1718_v16 = vadd.f32 %v3410_v1, %v1717_v10  ;;  %v2156_v62 = vpop.f32.mrb[14].mxu0  ;;  %1921 = vst.msk [vmem:[%s3418_s16 + $0xe8] sm:$0xff] %vm1539_vm14, %v1889_v23 }
 0x26c   : > { %vm1810_vm13 = vcmp.gt.f32.partialorder %v1726_v48, 0.0  ;;  %v1842_v50 = vmul.f32 0.01, %v1726_v48  ;;  %v1729_v39 = vadd.f32 %v2156_v62, %v3410_v1  ;;  %v1720_v19 = vpop.f32.mrb[15].mxu0 }
 0x26d   : > { %vm1808_vm15 = vcmp.gt.f32.partialorder %v1718_v16, 0.0  ;;  %v1840_v2 = vmul.f32 0.01, %v1718_v16  ;;  %v1721_v18 = vadd.f32 %v3410_v1, %v1720_v19 }
 0x26e   : > { %v1874_v27 = vsel %vm1810_vm13, %v1726_v48, %v1842_v50  ;;  %vm1811_vm0 = vcmp.gt.f32.partialorder %v1729_v39, 0.0  ;;  %v1843_v6 = vmul.f32 0.01, %v1729_v39 }
 0x26f   : > { %1906 = vst.msk [vmem:[%s3418_s16 + $0x70] sm:$0xff] %vm1539_vm14, %v1874_v27  ;;  %v1872_v36 = vsel %vm1808_vm15, %v1718_v16, %v1840_v2  ;;  %vm1809_vm1 = vcmp.gt.f32.partialorder %v1721_v18, 0.0  ;;  %v1841_v22 = vmul.f32 0.01, %v1721_v18 }
 0x270   : > { %1904 = vst.msk [vmem:[%s3418_s16 + $0x60] sm:$0xff] %vm1539_vm14, %v1872_v36  ;;  %v1875_v53 = vsel %vm1811_vm0, %v1729_v39, %v1843_v6 }
 0x271   : > { %1907 = vst.msk [vmem:[%s3418_s16 + $0x78] sm:$0xff] %vm1539_vm14, %v1875_v53  ;;  %v1873_v24 = vsel %vm1809_vm1, %v1721_v18, %v1841_v22 }
 0x272   : > { %1905 = vst.msk [vmem:[%s3418_s16 + $0x68] sm:$0xff] %vm1539_vm14, %v1873_v24 }
 0x273 PF: > { %s13_s14 = sadd.s32 1, %s2257_s14   ;;  %s3552_s12 = smov %s2253_s13 }
 0x274   : > { %p10_p5 = scmp.ge.s32.totalorder %s13_s14, 4   ;;  %s3553_s13 = smov %s3555_s15 }
 0x276   :  { %12 = sbr.rel (!%p10_p5) target bundleno = 2 (0x2), region = 63 }

</bundles_post_ra>
